<compile_context>
chip_gen: v7x
topology: tpu7x:2x2x1
jax: 0.10.0
libtpu: 0.0.40
codegen_flags: <defaults>
</compile_context>

<pallas_src>
import functools
import math

import jax
import jax.numpy as jnp
from jax.experimental import pallas as pl
from jax.experimental.pallas import tpu as pltpu

_NEG_INF = -1e30  # finite "masked" value: safe for tiled online softmax (no inf-inf NaN)


# ----------------------------------------------------------------------------
# helpers
# ----------------------------------------------------------------------------
def _vmem_limit_bytes():
    cap = 64 * 1024 * 1024  # conservative default (v7x physical VMEM)
    try:
        info = pltpu.get_tpu_info()
        cap = int(getattr(info, "vmem_capacity_bytes", cap) or cap)
    except Exception:
        pass
    # ~48 MiB on v7x (64 MiB physical), ~96 MiB on v5e / v6e (128 MiB physical)
    return max(32 * 1024 * 1024, min(cap * 3 // 4, 100 * 1024 * 1024))


def _round_up(n, m):
    return ((n + m - 1) // m) * m


def _layernorm_f32(x_f32, g_ref, b_ref, eps):
    """Single-pass LayerNorm (unbiased=False), elementwise math kept in f32."""
    inv_d = 1.0 / x_f32.shape[-1]
    s1 = jnp.sum(x_f32, axis=-1, keepdims=True)
    s2 = jnp.sum(x_f32 * x_f32, axis=-1, keepdims=True)
    mean = s1 * inv_d
    var = jnp.maximum(s2 * inv_d - mean * mean, 0.0)   # clamp catastrophic cancellation
    h = (x_f32 - mean) * jax.lax.rsqrt(var + eps)
    return g_ref[...].astype(jnp.float32) * h + b_ref[...].astype(jnp.float32)


# ----------------------------------------------------------------------------
# Kernel A: LayerNorm1 + causal flash MHA + out-proj + residual
# ----------------------------------------------------------------------------
def _ln_flash_mha_kernel(xq_ref, xkv_ref, g_ref, b_ref, wq_ref, wk_ref, wv_ref,
                         wo_ref, bo_ref, o_ref,
                         q_scr, m_scr, l_scr, acc_scr,
                         *, n_heads, head_dim, eps):
    qi = pl.program_id(1)
    ki = pl.program_id(2)
    tq = xq_ref.shape[0]
    tk = xkv_ref.shape[0]
    cdt = wq_ref.dtype  # MXU operand dtype (bf16-ready; f32 in the demo)

    def split_heads(t2d):  # (rows, D) -> (n_heads, rows, head_dim)
        return jnp.stack(
            [t2d[:, h * head_dim:(h + 1) * head_dim] for h in range(n_heads)],
            axis=0)

    # ---- init per (batch, q-tile): Q projection + online-softmax state -------
    @pl.when(ki == 0)
    def _():
        xq = xq_ref[...].astype(jnp.float32)
        hq = _layernorm_f32(xq, g_ref, b_ref, eps)
        q = jnp.dot(hq.astype(cdt), wq_ref[...], preferred_element_type=jnp.float32)
        q = q * (1.0 / (head_dim ** 0.5))              # fold softmax scale into q
        q_scr[...] = split_heads(q).astype(q_scr.dtype)
        m_scr[...] = jnp.full(m_scr.shape, _NEG_INF, m_scr.dtype)
        l_scr[...] = jnp.zeros(l_scr.shape, l_scr.dtype)
        acc_scr[...] = jnp.zeros(acc_scr.shape, acc_scr.dtype)

    # ---- online-softmax update; skip kv tiles fully above the causal diagonal -
    @pl.when(ki * tk < (qi + 1) * tq)
    def _():
        xkv = xkv_ref[...].astype(jnp.float32)
        hkv = _layernorm_f32(xkv, g_ref, b_ref, eps).astype(cdt)
        k = jnp.dot(hkv, wk_ref[...], preferred_element_type=jnp.float32)
        v = jnp.dot(hkv, wv_ref[...], preferred_element_type=jnp.float32)
        k3 = split_heads(k).astype(cdt)                # (H, tk, hd)
        v3 = split_heads(v).astype(cdt)

        s = jnp.einsum("hqd,hkd->hqk", q_scr[...], k3,
                       preferred_element_type=jnp.float32)          # (H, tq, tk)
        row = qi * tq + jax.lax.broadcasted_iota(jnp.int32, (tq, tk), 0)
        col = ki * tk + jax.lax.broadcasted_iota(jnp.int32, (tq, tk), 1)
        s = jnp.where((col > row)[None, :, :], _NEG_INF, s)

        m_prev = m_scr[...]
        m_new = jnp.maximum(m_prev, jnp.max(s, axis=-1, keepdims=True))
        alpha = jnp.exp(m_prev - m_new)
        p = jnp.exp(s - m_new)
        l_scr[...] = alpha * l_scr[...] + jnp.sum(p, axis=-1, keepdims=True)
        acc_scr[...] = alpha * acc_scr[...] + jnp.einsum(
            "hqk,hkd->hqd", p.astype(cdt), v3, preferred_element_type=jnp.float32)
        m_scr[...] = m_new

    # ---- finalize: normalize, single full-width out-projection, residual -----
    @pl.when(ki == pl.num_programs(2) - 1)
    def _():
        ctx = acc_scr[...] * pl.reciprocal(l_scr[...], approx=True)  # (H, tq, hd)
        ctx2d = jnp.concatenate([ctx[h] for h in range(n_heads)], axis=-1)  # (tq, D)
        out = jnp.dot(ctx2d.astype(cdt), wo_ref[...],
                      preferred_element_type=jnp.float32)
        out = out + bo_ref[...].astype(jnp.float32) + xq_ref[...].astype(jnp.float32)
        o_ref[...] = out.astype(o_ref.dtype)


def _pick_seq_tile(T):
    # multiples of 256 preferred (v6e/v7x 2x256x256 MXU); 128 acceptable; else full T
    for t in (256, 128):
        if T % t == 0:
            return t
    return T


def fused_ln_flash_attention(x, gamma, beta, wq, wk, wv, wo, bo, *, n_heads, eps=1e-5):
    B, T, D = x.shape
    assert D % n_heads == 0, "emb_dim must be divisible by n_heads"
    head_dim = D // n_heads
    t_tile = _pick_seq_tile(T)
    n_seq = T // t_tile
    cdt = wq.dtype

    kernel = functools.partial(_ln_flash_mha_kernel, n_heads=n_heads,
                               head_dim=head_dim, eps=eps)
    const = lambda b, qi, ki: (0, 0)
    return pl.pallas_call(
        kernel,
        out_shape=jax.ShapeDtypeStruct((B, T, D), x.dtype),
        grid_spec=pltpu.PrefetchScalarGridSpec(
            num_scalar_prefetch=0,
            grid=(B, n_seq, n_seq),
            in_specs=[
                pl.BlockSpec((None, t_tile, D), lambda b, qi, ki: (b, qi, 0)),  # x (q rows)
                pl.BlockSpec((None, t_tile, D), lambda b, qi, ki: (b, ki, 0)),  # x (kv rows)
                pl.BlockSpec((1, D), const),       # gamma1
                pl.BlockSpec((1, D), const),       # beta1
                pl.BlockSpec((D, D), const),       # Wq
                pl.BlockSpec((D, D), const),       # Wk
                pl.BlockSpec((D, D), const),       # Wv
                pl.BlockSpec((D, D), const),       # Wo
                pl.BlockSpec((1, D), const),       # bo
            ],
            out_specs=pl.BlockSpec((None, t_tile, D), lambda b, qi, ki: (b, qi, 0)),
            scratch_shapes=[
                pltpu.VMEM((n_heads, t_tile, head_dim), cdt),          # scaled Q
                pltpu.VMEM((n_heads, t_tile, 1), jnp.float32),         # running max m
                pltpu.VMEM((n_heads, t_tile, 1), jnp.float32),         # running sum l
                pltpu.VMEM((n_heads, t_tile, head_dim), jnp.float32),  # ctx accumulator
            ],
        ),
        compiler_params=pltpu.CompilerParams(
            dimension_semantics=("parallel", "parallel", "arbitrary"),
            vmem_limit_bytes=_vmem_limit_bytes(),
        ),
    )(x, x, gamma.reshape(1, D), beta.reshape(1, D), wq, wk, wv, wo, bo.reshape(1, D))


# ----------------------------------------------------------------------------
# Kernel B: LayerNorm2 + FeedForward (Linear -> tanh-GELU -> Linear) + residual
# ----------------------------------------------------------------------------
def _ln_ffn_kernel(x_ref, g_ref, b_ref, w1_ref, b1_ref, w2_ref, b2_ref, o_ref,
                   h_scr, acc_scr, *, eps):
    hk = pl.program_id(1)
    cdt = w1_ref.dtype

    @pl.when(hk == 0)
    def _():
        x = x_ref[...].astype(jnp.float32)
        hn = _layernorm_f32(x, g_ref, b_ref, eps)
        h_scr[...] = hn.astype(h_scr.dtype)
        acc_scr[...] = jnp.zeros(acc_scr.shape, acc_scr.dtype)

    a = jnp.dot(h_scr[...], w1_ref[...], preferred_element_type=jnp.float32)
    a = a + b1_ref[...].astype(jnp.float32)
    c = 0.7978845608028654                      # sqrt(2/pi)
    g = 0.5 * a * (1.0 + jnp.tanh(c * (a + 0.044715 * a * a * a)))
    acc_scr[...] += jnp.dot(g.astype(cdt), w2_ref[...],
                            preferred_element_type=jnp.float32)

    @pl.when(hk == pl.num_programs(1) - 1)
    def _():
        out = (acc_scr[...] + b2_ref[...].astype(jnp.float32)
               + x_ref[...].astype(jnp.float32))          # residual with pre-norm x
        o_ref[...] = out.astype(o_ref.dtype)


def _pick_hidden_tile(H):
    for t in (1024, 512, 256, 128):
        if H % t == 0:
            return t
    return H


def _pick_row_tile(rows, d, th, act_bytes, w_bytes, budget):
    def footprint(rt):
        io = 4 * rt * d * act_bytes                  # double-buffered x in + out
        wts = 2 * 2 * d * th * w_bytes               # double-buffered W1/W2 tiles
        scr = rt * d * (w_bytes + 4)                 # LN scratch + f32 accumulator
        mid = 3 * rt * th * 4                        # pre-GELU / GELU / cast copies
        return io + wts + scr + mid + (1 << 20)      # +1 MiB slack (biases, misc)

    if rows <= 256:
        return _round_up(rows, 8)                    # tiny inputs: one tile, no pad
    for rt in (1024, 512, 256):                      # 256-multiples for v6e/v7x MXU
        if footprint(rt) <= budget:
            return rt
    return 256


def fused_ln_ffn(x, gamma, beta, w1, b1, w2, b2, *, eps=1e-5):
    orig_shape = x.shape
    D = orig_shape[-1]
    H = w1.shape[-1]
    rows = math.prod(orig_shape[:-1])
    x2 = x.reshape(rows, D)

    budget = _vmem_limit_bytes()
    th = _pick_hidden_tile(H)
    rt = _pick_row_tile(rows, D, th, x.dtype.itemsize, w1.dtype.itemsize, budget)
    rows_p = _round_up(rows, rt)
    if rows_p != rows:
        x2 = jnp.pad(x2, ((0, rows_p - rows), (0, 0)))

    grid = (rows_p // rt, H // th)
    const = lambda i, h: (0, 0)

    out = pl.pallas_call(
        functools.partial(_ln_ffn_kernel, eps=eps),
        out_shape=jax.ShapeDtypeStruct((rows_p, D), x.dtype),
        grid_spec=pltpu.PrefetchScalarGridSpec(
            num_scalar_prefetch=0,
            grid=grid,
            in_specs=[
                pl.BlockSpec((rt, D), lambda i, h: (i, 0)),    # x rows (resident over h)
                pl.BlockSpec((1, D), const),                   # gamma2
                pl.BlockSpec((1, D), const),                   # beta2
                pl.BlockSpec((D, th), lambda i, h: (0, h)),    # W1 hidden tile
                pl.BlockSpec((1, th), lambda i, h: (0, h)),    # b1 hidden tile
                pl.BlockSpec((th, D), lambda i, h: (h, 0)),    # W2 hidden tile
                pl.BlockSpec((1, D), const),                   # b2
            ],
            out_specs=pl.BlockSpec((rt, D), lambda i, h: (i, 0)),
            scratch_shapes=[
                pltpu.VMEM((rt, D), w1.dtype),      # LN'd activations (matmul dtype)
                pltpu.VMEM((rt, D), jnp.float32),   # f32 accumulator over hidden tiles
            ],
        ),
        compiler_params=pltpu.CompilerParams(
            dimension_semantics=("parallel", "arbitrary"),
            vmem_limit_bytes=budget,
        ),
    )(x2, gamma.reshape(1, D), beta.reshape(1, D), w1, b1.reshape(1, H),
      w2, b2.reshape(1, D))

    if rows_p != rows:
        out = out[:rows]
    return out.reshape(orig_shape)


# ----------------------------------------------------------------------------
# Full TransformerBlock forward
# ----------------------------------------------------------------------------
def transformer_block(x, p, *, n_heads, eps=1e-5):
    x = fused_ln_flash_attention(x, p["gamma1"], p["beta1"], p["wq"], p["wk"],
                                 p["wv"], p["wo"], p["bo"], n_heads=n_heads, eps=eps)
    x = fused_ln_ffn(x, p["gamma2"], p["beta2"], p["w1"], p["b1"], p["w2"], p["b2"],
                     eps=eps)
    return x


# ----------------------------------------------------------------------------
# Reference (pure JAX, dropout = identity) and test
# ----------------------------------------------------------------------------
def reference_block(x, p, *, n_heads, eps=1e-5):
    def ln(t, g, b):
        m = t.mean(-1, keepdims=True)
        v = ((t - m) ** 2).mean(-1, keepdims=True)
        return g * ((t - m) / jnp.sqrt(v + eps)) + b

    B, T, D = x.shape
    hd = D // n_heads
    h = ln(x, p["gamma1"], p["beta1"])
    q = h @ p["wq"]; k = h @ p["wk"]; v = h @ p["wv"]
    split = lambda t: t.reshape(B, T, n_heads, hd).transpose(0, 2, 1, 3)
    q, k, v = split(q), split(k), split(v)
    s = jnp.einsum("bhqd,bhkd->bhqk", q, k) / (hd ** 0.5)
    mask = jnp.triu(jnp.ones((T, T), dtype=bool), 1)
    s = jnp.where(mask, -jnp.inf, s)
    w = jax.nn.softmax(s, axis=-1)
    ctx = jnp.einsum("bhqk,bhkd->bhqd", w, v).transpose(0, 2, 1, 3).reshape(B, T, D)
    x = x + ctx @ p["wo"] + p["bo"]

    h2 = ln(x, p["gamma2"], p["beta2"])
    a = h2 @ p["w1"] + p["b1"]
    g = 0.5 * a * (1.0 + jnp.tanh(jnp.sqrt(2.0 / jnp.pi) * (a + 0.044715 * a ** 3)))
    x = x + g @ p["w2"] + p["b2"]
    return x


if __name__ == "__main__":
    # cfg = {emb_dim: 32, context_length: 8, n_heads: 4, drop_rate: 0.0, qkv_bias: False}
    B, T, D, NH = 2, 8, 32, 4
    H = 4 * D

    key = jax.random.PRNGKey(0)
    ks = jax.random.split(key, 12)
    x = jax.random.normal(ks[0], (B, T, D), dtype=jnp.float32)

    params = {
        "gamma1": 1.0 + 0.05 * jax.random.normal(ks[1], (D,), jnp.float32),
        "beta1": 0.05 * jax.random.normal(ks[2], (D,), jnp.float32),
        "wq": 0.05 * jax.random.normal(ks[3], (D, D), jnp.float32),
        "wk": 0.05 * jax.random.normal(ks[4], (D, D), jnp.float32),
        "wv": 0.05 * jax.random.normal(ks[5], (D, D), jnp.float32),
        "wo": 0.05 * jax.random.normal(ks[6], (D, D), jnp.float32),
        "bo": 0.05 * jax.random.normal(ks[7], (D,), jnp.float32),
        "gamma2": 1.0 + 0.05 * jax.random.normal(ks[8], (D,), jnp.float32),
        "beta2": 0.05 * jax.random.normal(ks[9], (D,), jnp.float32),
        "w1": 0.05 * jax.random.normal(ks[10], (D, H), jnp.float32),
        "b1": jnp.zeros((H,), jnp.float32),
        "w2": 0.05 * jax.random.normal(ks[11], (H, D), jnp.float32),
        "b2": jnp.zeros((D,), jnp.float32),
    }

    out = transformer_block(x, params, n_heads=NH)
    out = jax.block_until_ready(out)

    ref = reference_block(x, params, n_heads=NH)
    assert out.shape == ref.shape
    err = float(jnp.max(jnp.abs(out - ref)))
    assert jnp.allclose(out, ref, atol=1e-2, rtol=1e-2), f"mismatch vs reference, max err={err}"

    print("KERNEL_OK")
</pallas_src>

<mosaic_0001>
module attributes {stable_mosaic.version = 11 : i64} {
  func.func @_ln_flash_mha_kernel(%arg0: i32, %arg1: i32, %arg2: i32, %arg3: memref<1x8x32xf32, #tpu.memory_space<vmem>>, %arg4: memref<1x8x32xf32, #tpu.memory_space<vmem>>, %arg5: memref<1x32xf32, #tpu.memory_space<vmem>>, %arg6: memref<1x32xf32, #tpu.memory_space<vmem>>, %arg7: memref<32x32xf32, #tpu.memory_space<vmem>>, %arg8: memref<32x32xf32, #tpu.memory_space<vmem>>, %arg9: memref<32x32xf32, #tpu.memory_space<vmem>>, %arg10: memref<32x32xf32, #tpu.memory_space<vmem>>, %arg11: memref<1x32xf32, #tpu.memory_space<vmem>>, %arg12: memref<1x8x32xf32, #tpu.memory_space<vmem>>, %arg13: memref<4x8x8xf32, #tpu.memory_space<vmem>>, %arg14: memref<4x8x1xf32, #tpu.memory_space<vmem>>, %arg15: memref<4x8x1xf32, #tpu.memory_space<vmem>>, %arg16: memref<4x8x8xf32, #tpu.memory_space<vmem>>) attributes {dimension_semantics = [#tpu.dimension_semantics<parallel>, #tpu.dimension_semantics<parallel>, #tpu.dimension_semantics<arbitrary>], iteration_bounds = array<i64: 2, 1, 1>, scalar_prefetch = 0 : i64, scratch_operands = 4 : i64, tpu.core_type = #tpu.core_type<tc>, window_params = [{transform_indices = @transform_0, window_bounds = array<i64: 1, 8, 32>}, {transform_indices = @transform_1, window_bounds = array<i64: 1, 8, 32>}, {pipeline_mode = #tpu.pipeline_mode<synchronous>, transform_indices = @transform_2, window_bounds = array<i64: 1, 32>}, {pipeline_mode = #tpu.pipeline_mode<synchronous>, transform_indices = @transform_3, window_bounds = array<i64: 1, 32>}, {pipeline_mode = #tpu.pipeline_mode<synchronous>, transform_indices = @transform_4, window_bounds = array<i64: 32, 32>}, {pipeline_mode = #tpu.pipeline_mode<synchronous>, transform_indices = @transform_5, window_bounds = array<i64: 32, 32>}, {pipeline_mode = #tpu.pipeline_mode<synchronous>, transform_indices = @transform_6, window_bounds = array<i64: 32, 32>}, {pipeline_mode = #tpu.pipeline_mode<synchronous>, transform_indices = @transform_7, window_bounds = array<i64: 32, 32>}, {pipeline_mode = #tpu.pipeline_mode<synchronous>, transform_indices = @transform_8, window_bounds = array<i64: 1, 32>}, {transform_indices = @transform_9, window_bounds = array<i64: 1, 8, 32>}]} {
    %c0_i32 = arith.constant 0 : i32
    %0 = arith.cmpi eq, %arg2, %c0_i32 : i32
    %1 = arith.extui %0 : i1 to i32
    %c0_i32_0 = arith.constant 0 : i32
    %2 = arith.cmpi ne, %1, %c0_i32_0 : i32
    scf.if %2 {
      %c0 = arith.constant 0 : index
      %c0_5 = arith.constant 0 : index
      %c0_6 = arith.constant 0 : index
      %12 = vector.load %arg3[%c0, %c0_5, %c0_6] : memref<1x8x32xf32, #tpu.memory_space<vmem>>, vector<1x8x32xf32>
      %13 = vector.shape_cast %12 : vector<1x8x32xf32> to vector<8x32xf32>
      %cst = arith.constant dense<0.000000e+00> : vector<8xf32>
      %14 = vector.multi_reduction <add>, %13, %cst [1] : vector<8x32xf32> to vector<8xf32>
      %15 = vector.shape_cast %14 : vector<8xf32> to vector<8x1xf32>
      %16 = arith.mulf %13, %13 : vector<8x32xf32>
      %cst_7 = arith.constant dense<0.000000e+00> : vector<8xf32>
      %17 = vector.multi_reduction <add>, %16, %cst_7 [1] : vector<8x32xf32> to vector<8xf32>
      %18 = vector.shape_cast %17 : vector<8xf32> to vector<8x1xf32>
      %cst_8 = arith.constant 3.125000e-02 : f32
      %19 = vector.broadcast %cst_8 : f32 to vector<8x1xf32>
      %20 = arith.mulf %15, %19 : vector<8x1xf32>
      %cst_9 = arith.constant 3.125000e-02 : f32
      %21 = vector.broadcast %cst_9 : f32 to vector<8x1xf32>
      %22 = arith.mulf %18, %21 : vector<8x1xf32>
      %23 = arith.mulf %20, %20 : vector<8x1xf32>
      %24 = arith.subf %22, %23 : vector<8x1xf32>
      %cst_10 = arith.constant 0.000000e+00 : f32
      %25 = vector.broadcast %cst_10 : f32 to vector<8x1xf32>
      %26 = arith.maximumf %24, %25 : vector<8x1xf32>
      %27 = vector.broadcast %20 : vector<8x1xf32> to vector<8x32xf32>
      %28 = arith.subf %13, %27 : vector<8x32xf32>
      %cst_11 = arith.constant 9.99999974E-6 : f32
      %29 = vector.broadcast %cst_11 : f32 to vector<8x1xf32>
      %30 = arith.addf %26, %29 : vector<8x1xf32>
      %31 = math.rsqrt %30 : vector<8x1xf32>
      %32 = vector.broadcast %31 : vector<8x1xf32> to vector<8x32xf32>
      %33 = arith.mulf %28, %32 : vector<8x32xf32>
      %c0_12 = arith.constant 0 : index
      %c0_13 = arith.constant 0 : index
      %34 = vector.load %arg5[%c0_12, %c0_13] : memref<1x32xf32, #tpu.memory_space<vmem>>, vector<1x32xf32>
      %35 = vector.broadcast %34 : vector<1x32xf32> to vector<8x32xf32>
      %36 = arith.mulf %35, %33 : vector<8x32xf32>
      %c0_14 = arith.constant 0 : index
      %c0_15 = arith.constant 0 : index
      %37 = vector.load %arg6[%c0_14, %c0_15] : memref<1x32xf32, #tpu.memory_space<vmem>>, vector<1x32xf32>
      %38 = vector.broadcast %37 : vector<1x32xf32> to vector<8x32xf32>
      %39 = arith.addf %36, %38 : vector<8x32xf32>
      %c0_16 = arith.constant 0 : index
      %c0_17 = arith.constant 0 : index
      %40 = vector.load %arg7[%c0_16, %c0_17] : memref<32x32xf32, #tpu.memory_space<vmem>>, vector<32x32xf32>
      %cst_18 = arith.constant dense<0.000000e+00> : vector<8x32xf32>
      %41 = tpu.matmul %39, %40, %cst_18 {dimension_numbers = #tpu.dot_dimension_numbers<[1], [0], [0], [1], [0, 0, 1, 1], [], []>} : vector<8x32xf32>, vector<32x32xf32>, vector<8x32xf32> -> vector<8x32xf32>
      %cst_19 = arith.constant 0.353553385 : f32
      %42 = vector.broadcast %cst_19 : f32 to vector<8x32xf32>
      %43 = arith.mulf %41, %42 : vector<8x32xf32>
      %44 = vector.extract_strided_slice %43 {offsets = [0, 0], sizes = [8, 8], strides = [1, 1]} : vector<8x32xf32> to vector<8x8xf32>
      %45 = vector.extract_strided_slice %43 {offsets = [0, 8], sizes = [8, 8], strides = [1, 1]} : vector<8x32xf32> to vector<8x8xf32>
      %46 = vector.extract_strided_slice %43 {offsets = [0, 16], sizes = [8, 8], strides = [1, 1]} : vector<8x32xf32> to vector<8x8xf32>
      %47 = vector.extract_strided_slice %43 {offsets = [0, 24], sizes = [8, 8], strides = [1, 1]} : vector<8x32xf32> to vector<8x8xf32>
      %48 = vector.shape_cast %44 : vector<8x8xf32> to vector<1x8x8xf32>
      %49 = vector.shape_cast %45 : vector<8x8xf32> to vector<1x8x8xf32>
      %50 = vector.shape_cast %46 : vector<8x8xf32> to vector<1x8x8xf32>
      %51 = vector.shape_cast %47 : vector<8x8xf32> to vector<1x8x8xf32>
      %52 = tpu.concatenate %48, %49, %50, %51 in 0 : vector<1x8x8xf32>, vector<1x8x8xf32>, vector<1x8x8xf32>, vector<1x8x8xf32> -> vector<4x8x8xf32>
      %c0_20 = arith.constant 0 : index
      %c0_21 = arith.constant 0 : index
      %c0_22 = arith.constant 0 : index
      %53 = vector.load %arg13[%c0_20, %c0_21, %c0_22] : memref<4x8x8xf32, #tpu.memory_space<vmem>>, vector<4x8x8xf32>
      tpu.vector_store %arg13[%c0_20, %c0_21, %c0_22], %52 {strides = array<i32>} : memref<4x8x8xf32, #tpu.memory_space<vmem>>, vector<4x8x8xf32>,
      %cst_23 = arith.constant -1.000000e+30 : f32
      %54 = vector.broadcast %cst_23 : f32 to vector<4x8x1xf32>
      %c0_24 = arith.constant 0 : index
      %c0_25 = arith.constant 0 : index
      %c0_26 = arith.constant 0 : index
      %55 = vector.load %arg14[%c0_24, %c0_25, %c0_26] : memref<4x8x1xf32, #tpu.memory_space<vmem>>, vector<4x8x1xf32>
      tpu.vector_store %arg14[%c0_24, %c0_25, %c0_26], %54 {strides = array<i32>} : memref<4x8x1xf32, #tpu.memory_space<vmem>>, vector<4x8x1xf32>,
      %cst_27 = arith.constant 0.000000e+00 : f32
      %56 = vector.broadcast %cst_27 : f32 to vector<4x8x1xf32>
      %c0_28 = arith.constant 0 : index
      %c0_29 = arith.constant 0 : index
      %c0_30 = arith.constant 0 : index
      %57 = vector.load %arg15[%c0_28, %c0_29, %c0_30] : memref<4x8x1xf32, #tpu.memory_space<vmem>>, vector<4x8x1xf32>
      tpu.vector_store %arg15[%c0_28, %c0_29, %c0_30], %56 {strides = array<i32>} : memref<4x8x1xf32, #tpu.memory_space<vmem>>, vector<4x8x1xf32>,
      %cst_31 = arith.constant 0.000000e+00 : f32
      %58 = vector.broadcast %cst_31 : f32 to vector<4x8x8xf32>
      %c0_32 = arith.constant 0 : index
      %c0_33 = arith.constant 0 : index
      %c0_34 = arith.constant 0 : index
      %59 = vector.load %arg16[%c0_32, %c0_33, %c0_34] : memref<4x8x8xf32, #tpu.memory_space<vmem>>, vector<4x8x8xf32>
      tpu.vector_store %arg16[%c0_32, %c0_33, %c0_34], %58 {strides = array<i32>} : memref<4x8x8xf32, #tpu.memory_space<vmem>>, vector<4x8x8xf32>,
    } else {
    }
    %c8_i32 = arith.constant 8 : i32
    %3 = arith.muli %arg2, %c8_i32 : i32
    %c1_i32 = arith.constant 1 : i32
    %4 = arith.addi %arg1, %c1_i32 : i32
    %c8_i32_1 = arith.constant 8 : i32
    %5 = arith.muli %4, %c8_i32_1 : i32
    %6 = arith.cmpi slt, %3, %5 : i32
    %7 = arith.extui %6 : i1 to i32
    %c0_i32_2 = arith.constant 0 : i32
    %8 = arith.cmpi ne, %7, %c0_i32_2 : i32
    scf.if %8 {
      %c0 = arith.constant 0 : index
      %c0_5 = arith.constant 0 : index
      %c0_6 = arith.constant 0 : index
      %12 = vector.load %arg4[%c0, %c0_5, %c0_6] : memref<1x8x32xf32, #tpu.memory_space<vmem>>, vector<1x8x32xf32>
      %13 = vector.shape_cast %12 : vector<1x8x32xf32> to vector<8x32xf32>
      %cst = arith.constant dense<0.000000e+00> : vector<8xf32>
      %14 = vector.multi_reduction <add>, %13, %cst [1] : vector<8x32xf32> to vector<8xf32>
      %15 = vector.shape_cast %14 : vector<8xf32> to vector<8x1xf32>
      %16 = arith.mulf %13, %13 : vector<8x32xf32>
      %cst_7 = arith.constant dense<0.000000e+00> : vector<8xf32>
      %17 = vector.multi_reduction <add>, %16, %cst_7 [1] : vector<8x32xf32> to vector<8xf32>
      %18 = vector.shape_cast %17 : vector<8xf32> to vector<8x1xf32>
      %cst_8 = arith.constant 3.125000e-02 : f32
      %19 = vector.broadcast %cst_8 : f32 to vector<8x1xf32>
      %20 = arith.mulf %15, %19 : vector<8x1xf32>
      %cst_9 = arith.constant 3.125000e-02 : f32
      %21 = vector.broadcast %cst_9 : f32 to vector<8x1xf32>
      %22 = arith.mulf %18, %21 : vector<8x1xf32>
      %23 = arith.mulf %20, %20 : vector<8x1xf32>
      %24 = arith.subf %22, %23 : vector<8x1xf32>
      %cst_10 = arith.constant 0.000000e+00 : f32
      %25 = vector.broadcast %cst_10 : f32 to vector<8x1xf32>
      %26 = arith.maximumf %24, %25 : vector<8x1xf32>
      %27 = vector.broadcast %20 : vector<8x1xf32> to vector<8x32xf32>
      %28 = arith.subf %13, %27 : vector<8x32xf32>
      %cst_11 = arith.constant 9.99999974E-6 : f32
      %29 = vector.broadcast %cst_11 : f32 to vector<8x1xf32>
      %30 = arith.addf %26, %29 : vector<8x1xf32>
      %31 = math.rsqrt %30 : vector<8x1xf32>
      %32 = vector.broadcast %31 : vector<8x1xf32> to vector<8x32xf32>
      %33 = arith.mulf %28, %32 : vector<8x32xf32>
      %c0_12 = arith.constant 0 : index
      %c0_13 = arith.constant 0 : index
      %34 = vector.load %arg5[%c0_12, %c0_13] : memref<1x32xf32, #tpu.memory_space<vmem>>, vector<1x32xf32>
      %35 = vector.broadcast %34 : vector<1x32xf32> to vector<8x32xf32>
      %36 = arith.mulf %35, %33 : vector<8x32xf32>
      %c0_14 = arith.constant 0 : index
      %c0_15 = arith.constant 0 : index
      %37 = vector.load %arg6[%c0_14, %c0_15] : memref<1x32xf32, #tpu.memory_space<vmem>>, vector<1x32xf32>
      %38 = vector.broadcast %37 : vector<1x32xf32> to vector<8x32xf32>
      %39 = arith.addf %36, %38 : vector<8x32xf32>
      %c0_16 = arith.constant 0 : index
      %c0_17 = arith.constant 0 : index
      %40 = vector.load %arg8[%c0_16, %c0_17] : memref<32x32xf32, #tpu.memory_space<vmem>>, vector<32x32xf32>
      %cst_18 = arith.constant dense<0.000000e+00> : vector<8x32xf32>
      %41 = tpu.matmul %39, %40, %cst_18 {dimension_numbers = #tpu.dot_dimension_numbers<[1], [0], [0], [1], [0, 0, 1, 1], [], []>} : vector<8x32xf32>, vector<32x32xf32>, vector<8x32xf32> -> vector<8x32xf32>
      %c0_19 = arith.constant 0 : index
      %c0_20 = arith.constant 0 : index
      %42 = vector.load %arg9[%c0_19, %c0_20] : memref<32x32xf32, #tpu.memory_space<vmem>>, vector<32x32xf32>
      %cst_21 = arith.constant dense<0.000000e+00> : vector<8x32xf32>
      %43 = tpu.matmul %39, %42, %cst_21 {dimension_numbers = #tpu.dot_dimension_numbers<[1], [0], [0], [1], [0, 0, 1, 1], [], []>} : vector<8x32xf32>, vector<32x32xf32>, vector<8x32xf32> -> vector<8x32xf32>
      %44 = vector.extract_strided_slice %41 {offsets = [0, 0], sizes = [8, 8], strides = [1, 1]} : vector<8x32xf32> to vector<8x8xf32>
      %45 = vector.extract_strided_slice %41 {offsets = [0, 8], sizes = [8, 8], strides = [1, 1]} : vector<8x32xf32> to vector<8x8xf32>
      %46 = vector.extract_strided_slice %41 {offsets = [0, 16], sizes = [8, 8], strides = [1, 1]} : vector<8x32xf32> to vector<8x8xf32>
      %47 = vector.extract_strided_slice %41 {offsets = [0, 24], sizes = [8, 8], strides = [1, 1]} : vector<8x32xf32> to vector<8x8xf32>
      %48 = vector.shape_cast %44 : vector<8x8xf32> to vector<1x8x8xf32>
      %49 = vector.shape_cast %45 : vector<8x8xf32> to vector<1x8x8xf32>
      %50 = vector.shape_cast %46 : vector<8x8xf32> to vector<1x8x8xf32>
      %51 = vector.shape_cast %47 : vector<8x8xf32> to vector<1x8x8xf32>
      %52 = tpu.concatenate %48, %49, %50, %51 in 0 : vector<1x8x8xf32>, vector<1x8x8xf32>, vector<1x8x8xf32>, vector<1x8x8xf32> -> vector<4x8x8xf32>
      %53 = vector.extract_strided_slice %43 {offsets = [0, 0], sizes = [8, 8], strides = [1, 1]} : vector<8x32xf32> to vector<8x8xf32>
      %54 = vector.extract_strided_slice %43 {offsets = [0, 8], sizes = [8, 8], strides = [1, 1]} : vector<8x32xf32> to vector<8x8xf32>
      %55 = vector.extract_strided_slice %43 {offsets = [0, 16], sizes = [8, 8], strides = [1, 1]} : vector<8x32xf32> to vector<8x8xf32>
      %56 = vector.extract_strided_slice %43 {offsets = [0, 24], sizes = [8, 8], strides = [1, 1]} : vector<8x32xf32> to vector<8x8xf32>
      %57 = vector.shape_cast %53 : vector<8x8xf32> to vector<1x8x8xf32>
      %58 = vector.shape_cast %54 : vector<8x8xf32> to vector<1x8x8xf32>
      %59 = vector.shape_cast %55 : vector<8x8xf32> to vector<1x8x8xf32>
      %60 = vector.shape_cast %56 : vector<8x8xf32> to vector<1x8x8xf32>
      %61 = tpu.concatenate %57, %58, %59, %60 in 0 : vector<1x8x8xf32>, vector<1x8x8xf32>, vector<1x8x8xf32>, vector<1x8x8xf32> -> vector<4x8x8xf32>
      %c0_22 = arith.constant 0 : index
      %c0_23 = arith.constant 0 : index
      %c0_24 = arith.constant 0 : index
      %62 = vector.load %arg13[%c0_22, %c0_23, %c0_24] : memref<4x8x8xf32, #tpu.memory_space<vmem>>, vector<4x8x8xf32>
      "tpu.trace_start"() <{level = 10 : i32, message = "hqd,hkd->hqk"}> : () -> ()
      %cst_25 = arith.constant dense<0.000000e+00> : vector<4x8x8xf32>
      %63 = tpu.matmul %62, %52, %cst_25 {dimension_numbers = #tpu.dot_dimension_numbers<[2], [2], [1], [1], [0, 0, 0, 1, 1, 1], [0], [0]>} : vector<4x8x8xf32>, vector<4x8x8xf32>, vector<4x8x8xf32> -> vector<4x8x8xf32>
      "tpu.trace_stop"() : () -> ()
      %c8_i32_26 = arith.constant 8 : i32
      %64 = arith.muli %arg1, %c8_i32_26 : i32
      %65 = tpu.iota {dimensions = array<i32: 0>} : vector<8x8xi32>
      %66 = vector.broadcast %64 : i32 to vector<8x8xi32>
      %67 = arith.addi %66, %65 : vector<8x8xi32>
      %c8_i32_27 = arith.constant 8 : i32
      %68 = arith.muli %arg2, %c8_i32_27 : i32
      %69 = tpu.iota {dimensions = array<i32: 1>} : vector<8x8xi32>
      %70 = vector.broadcast %68 : i32 to vector<8x8xi32>
      %71 = arith.addi %70, %69 : vector<8x8xi32>
      %72 = arith.cmpi sgt, %71, %67 : vector<8x8xi32>
      %73 = vector.shape_cast %72 : vector<8x8xi1> to vector<1x8x8xi1>
      %cst_28 = arith.constant -1.000000e+30 : f32
      %74 = vector.shape_cast %73 : vector<1x8x8xi1> to vector<1x8x8xi1>
      %75 = vector.broadcast %74 : vector<1x8x8xi1> to vector<4x8x8xi1>
      %76 = vector.broadcast %cst_28 : f32 to vector<4x8x8xf32>
      %77 = arith.select %75, %76, %63 : vector<4x8x8xi1>, vector<4x8x8xf32>
      %c0_29 = arith.constant 0 : index
      %c0_30 = arith.constant 0 : index
      %c0_31 = arith.constant 0 : index
      %78 = vector.load %arg14[%c0_29, %c0_30, %c0_31] : memref<4x8x1xf32, #tpu.memory_space<vmem>>, vector<4x8x1xf32>
      %cst_32 = arith.constant dense<0xFF800000> : vector<4x8xf32>
      %79 = vector.multi_reduction <maximumf>, %77, %cst_32 [2] : vector<4x8x8xf32> to vector<4x8xf32>
      %80 = vector.shape_cast %79 : vector<4x8xf32> to vector<4x8x1xf32>
      %81 = arith.maximumf %78, %80 : vector<4x8x1xf32>
      %82 = arith.subf %78, %81 : vector<4x8x1xf32>
      %83 = math.exp %82 : vector<4x8x1xf32>
      %84 = vector.broadcast %81 : vector<4x8x1xf32> to vector<4x8x8xf32>
      %85 = arith.subf %77, %84 : vector<4x8x8xf32>
      %86 = math.exp %85 : vector<4x8x8xf32>
      %c0_33 = arith.constant 0 : index
      %c0_34 = arith.constant 0 : index
      %c0_35 = arith.constant 0 : index
      %87 = vector.load %arg15[%c0_33, %c0_34, %c0_35] : memref<4x8x1xf32, #tpu.memory_space<vmem>>, vector<4x8x1xf32>
      %88 = arith.mulf %83, %87 : vector<4x8x1xf32>
      %cst_36 = arith.constant dense<0.000000e+00> : vector<4x8xf32>
      %89 = vector.multi_reduction <add>, %86, %cst_36 [2] : vector<4x8x8xf32> to vector<4x8xf32>
      %90 = vector.shape_cast %89 : vector<4x8xf32> to vector<4x8x1xf32>
      %91 = arith.addf %88, %90 : vector<4x8x1xf32>
      %c0_37 = arith.constant 0 : index
      %c0_38 = arith.constant 0 : index
      %c0_39 = arith.constant 0 : index
      %92 = vector.load %arg15[%c0_37, %c0_38, %c0_39] : memref<4x8x1xf32, #tpu.memory_space<vmem>>, vector<4x8x1xf32>
      tpu.vector_store %arg15[%c0_37, %c0_38, %c0_39], %91 {strides = array<i32>} : memref<4x8x1xf32, #tpu.memory_space<vmem>>, vector<4x8x1xf32>,
      %c0_40 = arith.constant 0 : index
      %c0_41 = arith.constant 0 : index
      %c0_42 = arith.constant 0 : index
      %93 = vector.load %arg16[%c0_40, %c0_41, %c0_42] : memref<4x8x8xf32, #tpu.memory_space<vmem>>, vector<4x8x8xf32>
      %94 = vector.broadcast %83 : vector<4x8x1xf32> to vector<4x8x8xf32>
      %95 = arith.mulf %94, %93 : vector<4x8x8xf32>
      "tpu.trace_start"() <{level = 10 : i32, message = "hqk,hkd->hqd"}> : () -> ()
      %cst_43 = arith.constant dense<0.000000e+00> : vector<4x8x8xf32>
      %96 = tpu.matmul %86, %61, %cst_43 {dimension_numbers = #tpu.dot_dimension_numbers<[2], [1], [1], [2], [0, 0, 0, 1, 1, 2], [0], [0]>} : vector<4x8x8xf32>, vector<4x8x8xf32>, vector<4x8x8xf32> -> vector<4x8x8xf32>
      "tpu.trace_stop"() : () -> ()
      %97 = arith.addf %95, %96 : vector<4x8x8xf32>
      %c0_44 = arith.constant 0 : index
      %c0_45 = arith.constant 0 : index
      %c0_46 = arith.constant 0 : index
      %98 = vector.load %arg16[%c0_44, %c0_45, %c0_46] : memref<4x8x8xf32, #tpu.memory_space<vmem>>, vector<4x8x8xf32>
      tpu.vector_store %arg16[%c0_44, %c0_45, %c0_46], %97 {strides = array<i32>} : memref<4x8x8xf32, #tpu.memory_space<vmem>>, vector<4x8x8xf32>,
      %c0_47 = arith.constant 0 : index
      %c0_48 = arith.constant 0 : index
      %c0_49 = arith.constant 0 : index
      %99 = vector.load %arg14[%c0_47, %c0_48, %c0_49] : memref<4x8x1xf32, #tpu.memory_space<vmem>>, vector<4x8x1xf32>
      tpu.vector_store %arg14[%c0_47, %c0_48, %c0_49], %81 {strides = array<i32>} : memref<4x8x1xf32, #tpu.memory_space<vmem>>, vector<4x8x1xf32>,
    } else {
    }
    %c0_i32_3 = arith.constant 0 : i32
    %9 = arith.cmpi eq, %arg2, %c0_i32_3 : i32
    %10 = arith.extui %9 : i1 to i32
    %c0_i32_4 = arith.constant 0 : i32
    %11 = arith.cmpi ne, %10, %c0_i32_4 : i32
    scf.if %11 {
      %c0 = arith.constant 0 : index
      %c0_5 = arith.constant 0 : index
      %c0_6 = arith.constant 0 : index
      %12 = vector.load %arg16[%c0, %c0_5, %c0_6] : memref<4x8x8xf32, #tpu.memory_space<vmem>>, vector<4x8x8xf32>
      %c0_7 = arith.constant 0 : index
      %c0_8 = arith.constant 0 : index
      %c0_9 = arith.constant 0 : index
      %13 = vector.load %arg15[%c0_7, %c0_8, %c0_9] : memref<4x8x1xf32, #tpu.memory_space<vmem>>, vector<4x8x1xf32>
      %14 = tpu.reciprocal %13 {approx = true} : vector<4x8x1xf32> -> vector<4x8x1xf32>
      %15 = vector.broadcast %14 : vector<4x8x1xf32> to vector<4x8x8xf32>
      %16 = arith.mulf %12, %15 : vector<4x8x8xf32>
      %17 = vector.extract_strided_slice %16 {offsets = [0, 0, 0], sizes = [1, 8, 8], strides = [1, 1, 1]} : vector<4x8x8xf32> to vector<1x8x8xf32>
      %18 = vector.shape_cast %17 : vector<1x8x8xf32> to vector<8x8xf32>
      %19 = vector.extract_strided_slice %16 {offsets = [1, 0, 0], sizes = [1, 8, 8], strides = [1, 1, 1]} : vector<4x8x8xf32> to vector<1x8x8xf32>
      %20 = vector.shape_cast %19 : vector<1x8x8xf32> to vector<8x8xf32>
      %21 = vector.extract_strided_slice %16 {offsets = [2, 0, 0], sizes = [1, 8, 8], strides = [1, 1, 1]} : vector<4x8x8xf32> to vector<1x8x8xf32>
      %22 = vector.shape_cast %21 : vector<1x8x8xf32> to vector<8x8xf32>
      %23 = vector.extract_strided_slice %16 {offsets = [3, 0, 0], sizes = [1, 8, 8], strides = [1, 1, 1]} : vector<4x8x8xf32> to vector<1x8x8xf32>
      %24 = vector.shape_cast %23 : vector<1x8x8xf32> to vector<8x8xf32>
      %25 = tpu.concatenate %18, %20, %22, %24 in 1 : vector<8x8xf32>, vector<8x8xf32>, vector<8x8xf32>, vector<8x8xf32> -> vector<8x32xf32>
      %c0_10 = arith.constant 0 : index
      %c0_11 = arith.constant 0 : index
      %26 = vector.load %arg10[%c0_10, %c0_11] : memref<32x32xf32, #tpu.memory_space<vmem>>, vector<32x32xf32>
      %cst = arith.constant dense<0.000000e+00> : vector<8x32xf32>
      %27 = tpu.matmul %25, %26, %cst {dimension_numbers = #tpu.dot_dimension_numbers<[1], [0], [0], [1], [0, 0, 1, 1], [], []>} : vector<8x32xf32>, vector<32x32xf32>, vector<8x32xf32> -> vector<8x32xf32>
      %c0_12 = arith.constant 0 : index
      %c0_13 = arith.constant 0 : index
      %28 = vector.load %arg11[%c0_12, %c0_13] : memref<1x32xf32, #tpu.memory_space<vmem>>, vector<1x32xf32>
      %29 = vector.broadcast %28 : vector<1x32xf32> to vector<8x32xf32>
      %30 = arith.addf %27, %29 : vector<8x32xf32>
      %c0_14 = arith.constant 0 : index
      %c0_15 = arith.constant 0 : index
      %c0_16 = arith.constant 0 : index
      %31 = vector.load %arg3[%c0_14, %c0_15, %c0_16] : memref<1x8x32xf32, #tpu.memory_space<vmem>>, vector<1x8x32xf32>
      %32 = vector.shape_cast %31 : vector<1x8x32xf32> to vector<8x32xf32>
      %33 = arith.addf %30, %32 : vector<8x32xf32>
      %c0_17 = arith.constant 0 : index
      %c0_18 = arith.constant 0 : index
      %c0_19 = arith.constant 0 : index
      %34 = vector.load %arg12[%c0_17, %c0_18, %c0_19] : memref<1x8x32xf32, #tpu.memory_space<vmem>>, vector<1x8x32xf32>
      %35 = vector.shape_cast %34 : vector<1x8x32xf32> to vector<8x32xf32>
      %36 = vector.shape_cast %33 : vector<8x32xf32> to vector<1x8x32xf32>
      tpu.vector_store %arg12[%c0_17, %c0_18, %c0_19], %36 {strides = array<i32>} : memref<1x8x32xf32, #tpu.memory_space<vmem>>, vector<1x8x32xf32>,
    } else {
    }
    return
  }
  func.func @transform_0(%arg0: i32, %arg1: i32, %arg2: i32) -> (i32, i32, i32) {
    %c0_i32 = arith.constant 0 : i32
    %c0_i32_0 = arith.constant 0 : i32
    return %arg0, %arg1, %c0_i32 : i32, i32, i32
  }
  func.func @transform_1(%arg0: i32, %arg1: i32, %arg2: i32) -> (i32, i32, i32) {
    %c0_i32 = arith.constant 0 : i32
    %c0_i32_0 = arith.constant 0 : i32
    return %arg0, %arg2, %c0_i32 : i32, i32, i32
  }
  func.func @transform_2(%arg0: i32, %arg1: i32, %arg2: i32) -> (i32, i32) {
    %c0_i32 = arith.constant 0 : i32
    %c0_i32_0 = arith.constant 0 : i32
    %c0_i32_1 = arith.constant 0 : i32
    return %c0_i32, %c0_i32_0 : i32, i32
  }
  func.func @transform_3(%arg0: i32, %arg1: i32, %arg2: i32) -> (i32, i32) {
    %c0_i32 = arith.constant 0 : i32
    %c0_i32_0 = arith.constant 0 : i32
    %c0_i32_1 = arith.constant 0 : i32
    return %c0_i32, %c0_i32_0 : i32, i32
  }
  func.func @transform_4(%arg0: i32, %arg1: i32, %arg2: i32) -> (i32, i32) {
    %c0_i32 = arith.constant 0 : i32
    %c0_i32_0 = arith.constant 0 : i32
    %c0_i32_1 = arith.constant 0 : i32
    return %c0_i32, %c0_i32_0 : i32, i32
  }
  func.func @transform_5(%arg0: i32, %arg1: i32, %arg2: i32) -> (i32, i32) {
    %c0_i32 = arith.constant 0 : i32
    %c0_i32_0 = arith.constant 0 : i32
    %c0_i32_1 = arith.constant 0 : i32
    return %c0_i32, %c0_i32_0 : i32, i32
  }
  func.func @transform_6(%arg0: i32, %arg1: i32, %arg2: i32) -> (i32, i32) {
    %c0_i32 = arith.constant 0 : i32
    %c0_i32_0 = arith.constant 0 : i32
    %c0_i32_1 = arith.constant 0 : i32
    return %c0_i32, %c0_i32_0 : i32, i32
  }
  func.func @transform_7(%arg0: i32, %arg1: i32, %arg2: i32) -> (i32, i32) {
    %c0_i32 = arith.constant 0 : i32
    %c0_i32_0 = arith.constant 0 : i32
    %c0_i32_1 = arith.constant 0 : i32
    return %c0_i32, %c0_i32_0 : i32, i32
  }
  func.func @transform_8(%arg0: i32, %arg1: i32, %arg2: i32) -> (i32, i32) {
    %c0_i32 = arith.constant 0 : i32
    %c0_i32_0 = arith.constant 0 : i32
    %c0_i32_1 = arith.constant 0 : i32
    return %c0_i32, %c0_i32_0 : i32, i32
  }
  func.func @transform_9(%arg0: i32, %arg1: i32, %arg2: i32) -> (i32, i32, i32) {
    %c0_i32 = arith.constant 0 : i32
    %c0_i32_0 = arith.constant 0 : i32
    return %arg0, %arg1, %c0_i32 : i32, i32, i32
  }
}

</mosaic_0001>

<bundles_post_ra>
// kernel: tpu_custom_call.1
= control target key start
LH: loop header
LB: loop body
LE: loop exit
PB: predicated region body
PF: predicated region fallthrough
CT: control target
= control target key end

     0   :  { %s3072_s0 = inlined_call_operand.hbm [shape: f32[2,8,32], index: 0, kind: input, shape index: {}]   ;;  %s3073_s1 = inlined_call_operand.hbm [shape: f32[2,8,32], index: 1, kind: input, shape index: {}]   ;;  %s3074_s2 = inlined_call_operand.vmem [shape: f32[1,32], index: 2, kind: input, shape index: {}]   ;;  %s3075_s3 = inlined_call_operand.vmem [shape: f32[1,32], index: 3, kind: input, shape index: {}]   ;;  %s3076_s4 = inlined_call_operand.hbm [shape: f32[32,32], index: 4, kind: input, shape index: {}]   ;;  %s3077_s5 = inlined_call_operand.hbm [shape: f32[32,32], index: 5, kind: input, shape index: {}]   ;;  %s3078_s6 = inlined_call_operand.hbm [shape: f32[32,32], index: 6, kind: input, shape index: {}]   ;;  %s3079_s7 = inlined_call_operand.hbm [shape: f32[32,32], index: 7, kind: input, shape index: {}]   ;;  %s3080_s8 = inlined_call_operand.vmem [shape: f32[1,32], index: 8, kind: input, shape index: {}]   ;;  %s3081_s9 = inlined_call_operand.hbm [shape: f32[2,8,32], index: 9, kind: output, shape index: {}]  }
   0x1   :  { %3088 = sst [smem:[#allocation26_spill]] %s3076_s4 }
   0x2   :  { %3089 = sst [smem:[#allocation27_spill]] %s3077_s5 }
   0x3   :  { %3090 = sst [smem:[#allocation28_spill]] %s3078_s6 }
   0x4   :  { %3091 = sst [smem:[#allocation29_spill]] %s3079_s7 }
   0x5   :  { %3092 = sst [smem:[#allocation30_spill]] %s3080_s8 }
   0x6   :  { %3093 = sst [smem:[#allocation31_spill]] %s3081_s9 }
   0x7   :  { %14 = vsyncpa [#allocation7], 0 }
   0x8   :  { %16 = vsyncpa [#allocation7 + $0x1], 0 }
   0x9   :  { %17 = vsyncpa [#allocation10], 0 }
   0xa   :  { %19 = vsyncpa [#allocation10 + $0x1], 0 }
   0xb   :  { %20 = vsyncpa [#allocation13], 0 }
   0xc   :  { %21 = vsyncpa [#allocation16], 0 }
   0xd   :  { %22 = vsyncpa [#allocation8], 0 }
   0xe   :  { %24 = vsyncpa [#allocation8 + $0x1], 0  ;;  %s2556_s30 = smov 0   ;;  %s2558_s10 = smov 0  }
   0xf   :  { %s2560_s11 = smov 0   ;;  %s2562_s12 = smov 0  }
  0x10   :  { %s2564_s13 = smov 0   ;;  %s2566_s14 = smov 0  }
  0x11 LB: > { %3094 = sst [smem:[#allocation24_spill]] %s2476_s12  ;;  %s2587_s15 = sadd.s32 4294967295, %s2484_s14   ;;  %s2484_s14 = sphi %s2566_s14, %s30_s14   ;;  %s2480_s13 = sphi %s2564_s13, %s3128_s13   ;;  %s2476_s12 = sphi %s2562_s12, %s3127_s12   ;;  %s2472_s11 = sphi %s2560_s11, %s3126_s11   ;;  %s2468_s10 = sphi %s2558_s10, %s3125_s10   ;;  %s2464_s30 = sphi %s2556_s30, %s3124_s30  }
  0x12   : > { %p1876_p0 = scmp.ge.s32.totalorder %s2484_s14, 1  ;;  %p3083_p1 = scmp.eq.s32.totalorder %s2587_s15, 0 }
  0x13   : > { %p285_p2 = scmp.lt.s32.totalorder %s2484_s14, 3  ;;  %s2486_s17 = smov [#allocation11]  }
  0x14   : > { %s303_s18 = sshll.u32 %s2486_s17, 4  ;;  %s2487_s20 = smov [#allocation12]   ;;  %s2596_s18 = int_to_ptr.vmem [resolvable:$true] %s303_s18 }
  0x15   : > { %p2592_p3 = pnand %p1876_p0, %p285_p2  ;;  %s316_s21 = sshll.u32 %s2487_s20, 4  ;;  %s2607_s21 = int_to_ptr.vmem [resolvable:$true] %s316_s21 }
  0x16   : > { %s2488_s22 = smov [#allocation14]   ;;  %s3097_s4 = sld [smem:[#allocation26_spill]] }
  0x17   : > { %s3095_s16 = scalar_select %p2592_p3, 1, 0 }
  0x18   : > { %p2085_p4 = pneg %p2592_p3  ;;  %s2609_s23 = sshll.u32 %s2488_s22, 4  ;;  %s330_s23 = int_to_ptr.vmem [resolvable:$true] %s2609_s23 }
  0x1a   : > { %p2603_p6 = pnand %p2085_p4, %p3083_p1 }
  0x1c   : > { %s2214_s26 = scalar_lea.hbm %s3097_s4, 512  ;;  %p2619_p8 = pneg %p2603_p6 }
  0x1d   : > { %p2215_p7 = scmp.ne.s32.totalorder %s3097_s4, %s2214_s26  ;;  %p2221_p11 = scmp.lt.u32.totalorder %s2214_s26, %s3097_s4 }
  0x1f   : > { %p2217_p9 = pnand %p2619_p8, %p2215_p7 }
  0x21   : > { %p2218_p10 = pneg %p2217_p9 }
  0x23   : > { %p2223_p12 = pnand %p2221_p11, %p2218_p10 }
  0x25   : > { %2226 = shalt.err (!%p2223_p12)
}
  0x26   : > { %s2227_s22 = scalar_lea.vmem %s2596_s18, 512  ;;  %p2235_p4 = scmp.lt.s32.totalorder %s2596_s18, %s2596_s18 }
  0x27   : > { %p2228_p13 = scmp.ne.s32.totalorder %s2596_s18, %s2227_s22  ;;  %p2236_p5 = scmp.lt.s32.totalorder %s2227_s22, %s2227_s22 }
  0x29   : > { %p2230_p0 = pnand %p2228_p13, %p2619_p8  ;;  %p2237_p7 = por %p2236_p5, %p2235_p4 }
  0x2b   : > { %p2231_p2 = pneg %p2230_p0 }
  0x2d   : > { %p2238_p9 = pnand %p2237_p7, %p2231_p2 }
  0x2f   : > { %2241 = shalt.err (!%p2238_p9)
}
  0x30   : > { %s2489_s24 = smov 128   ;;  %s2490_s25 = smov 8  }
  0x31   : > { %2088 = dma.hbm_to_vmem [thread:$0]  (!%p2603_p6), %s3097_s4, 512, %s2596_s18, [#allocation10], %s2489_s24, %s2489_s24, %s2490_s25  }
  0x32   : > { %s3099_s5 = sld [smem:[#allocation27_spill]] }
  0x38   : > { %s2242_s20 = scalar_lea.hbm %s3099_s5, 512 }
  0x39   : > { %p2243_p5 = scmp.ne.s32.totalorder %s3099_s5, %s2242_s20  ;;  %p2249_p12 = scmp.lt.u32.totalorder %s2242_s20, %s3099_s5 }
  0x3b   : > { %p2245_p10 = pnand %p2243_p5, %p2619_p8 }
  0x3d   : > { %p2246_p11 = pneg %p2245_p10 }
  0x3f   : > { %p2251_p13 = pnand %p2249_p12, %p2246_p11 }
  0x41   : > { %2254 = shalt.err (!%p2251_p13)
}
  0x42   : > { %s2255_s18 = scalar_lea.vmem %s2607_s21, 512  ;;  %p2263_p7 = scmp.lt.s32.totalorder %s2607_s21, %s2607_s21 }
  0x43   : > { %p2256_p0 = scmp.ne.s32.totalorder %s2607_s21, %s2255_s18  ;;  %p2264_p9 = scmp.lt.s32.totalorder %s2255_s18, %s2255_s18 }
  0x45   : > { %p2258_p2 = pnand %p2256_p0, %p2619_p8  ;;  %p2265_p5 = por %p2264_p9, %p2263_p7 }
  0x47   : > { %p2259_p4 = pneg %p2258_p2 }
  0x49   : > { %p2266_p10 = pnand %p2265_p5, %p2259_p4 }
  0x4b   : > { %2269 = shalt.err (!%p2266_p10)
}
  0x4c   : > { %2091 = dma.hbm_to_vmem [thread:$0]  (!%p2603_p6), %s3099_s5, 512, %s2607_s21, [#allocation13], %s2489_s24, %s2489_s24, %s2490_s25  }
  0x4d   : > { %s3100_s6 = sld [smem:[#allocation28_spill]] }
  0x53   : > { %s2270_s27 = scalar_lea.hbm %s3100_s6, 512 }
  0x54   : > { %p2271_p11 = scmp.ne.s32.totalorder %s3100_s6, %s2270_s27  ;;  %p2277_p0 = scmp.lt.u32.totalorder %s2270_s27, %s3100_s6 }
  0x56   : > { %p2273_p12 = pnand %p2271_p11, %p2619_p8 }
  0x58   : > { %p2274_p13 = pneg %p2273_p12 }
  0x5a   : > { %p2279_p2 = pnand %p2277_p0, %p2274_p13 }
  0x5c   : > { %2282 = shalt.err (!%p2279_p2)
}
  0x5d   : > { %s2283_s18 = scalar_lea.vmem %s330_s23, 512  ;;  %p2291_p5 = scmp.lt.s32.totalorder %s330_s23, %s330_s23 }
  0x5e   : > { %p2284_p4 = scmp.ne.s32.totalorder %s330_s23, %s2283_s18  ;;  %p2292_p10 = scmp.lt.s32.totalorder %s2283_s18, %s2283_s18 }
  0x60   : > { %p2286_p7 = pnand %p2284_p4, %p2619_p8  ;;  %p2293_p1 = por %p2292_p10, %p2291_p5 }
  0x62   : > { %p2287_p9 = pneg %p2286_p7 }
  0x64   : > { %p2294_p3 = pnand %p2293_p1, %p2287_p9 }
  0x66   : > { %2297 = shalt.err (!%p2294_p3)
}
  0x67   : > { %2094 = dma.hbm_to_vmem [thread:$0]  (!%p2603_p6), %s3100_s6, 512, %s330_s23, [#allocation13], %s2489_s24, %s2489_s24, %s2490_s25  }
  0x68   : > { %s2491_s9 = smov [#allocation15]   ;;  %s3101_s7 = sld [smem:[#allocation29_spill]] }
  0x69   : > { %s342_s12 = sshll.u32 %s2491_s9, 4  ;;  %s343_s12 = int_to_ptr.vmem [resolvable:$true] %s342_s12 }
  0x6e   : > { %s2298_s28 = scalar_lea.hbm %s3101_s7, 512 }
  0x6f   : > { %p2299_p1 = scmp.ne.s32.totalorder %s3101_s7, %s2298_s28  ;;  %p2305_p12 = scmp.lt.u32.totalorder %s2298_s28, %s3101_s7 }
  0x71   : > { %p2301_p3 = pnand %p2299_p1, %p2619_p8 }
  0x73   : > { %p2302_p11 = pneg %p2301_p3 }
  0x75   : > { %p2307_p13 = pnand %p2305_p12, %p2302_p11 }
  0x77   : > { %2310 = shalt.err (!%p2307_p13)
}
  0x78   : > { %s2311_s23 = scalar_lea.vmem %s343_s12, 512  ;;  %p2319_p7 = scmp.lt.s32.totalorder %s343_s12, %s343_s12 }
  0x79   : > { %p2312_p0 = scmp.ne.s32.totalorder %s343_s12, %s2311_s23  ;;  %p2320_p9 = scmp.lt.s32.totalorder %s2311_s23, %s2311_s23 }
  0x7b   : > { %p2314_p2 = pnand %p2312_p0, %p2619_p8  ;;  %p2321_p5 = por %p2320_p9, %p2319_p7 }
  0x7d   : > { %p2315_p4 = pneg %p2314_p2 }
  0x7f   : > { %p2322_p10 = pnand %p2321_p5, %p2315_p4 }
  0x81   : > { %2325 = shalt.err (!%p2322_p10)
}
  0x82   : > { %2097 = dma.hbm_to_vmem [thread:$0]  (!%p2603_p6), %s3101_s7, 512, %s343_s12, [#allocation16], %s2489_s24, %s2489_s24, %s2490_s25  }
  0x83   : > { %s1875_s19 = sadd.s32 4294967294, %s2484_s14   ;;  %s49_s29 = sadd.s32 1, %s2480_s13 }
  0x84   : > { %p51_p8 = scmp.ge.s32.totalorder %s49_s29, 2  ;;  %s58_s9 = sadd.s32 1, %s2472_s11 }
  0x85   : > { %p65_p1 = scmp.ne.s32.totalorder %s2472_s11, %s2468_s10  ;;  %p66_p3 = scmp.eq.s32.totalorder %s2484_s14, 0 }
  0x86   : > { %s3130_s29 = smov (%p51_p8, %s49_s29), 0  ;;  %p71_p12 = scmp.ne.s32.totalorder %s2468_s10, %s2464_s30 }
  0x87   : > { %3102 = sst [smem:[#allocation25_spill]] %s3130_s29  ;;  %p2720_p11 = por %p66_p3, %p65_p1 }
  0x88   : > { %s53_s24 = ssub.s32 %s2480_s13, %s3130_s29  ;;  %p272_p6 = scmp.eq.s32.totalorder %s2587_s15, 1 }
  0x89   : > { %p56_p13 = scmp.eq.s32.totalorder %s53_s24, 0  ;;  %p3104_p0 = scmp.eq.s32.totalorder %s2587_s15, 0 }
  0x8a   : > { %p2735_p4 = por %p272_p6, %p65_p1  ;;  %p278_p7 = scmp.eq.s32.totalorder %s1875_s19, 1 }
  0x8b   : > { %p2731_p2 = por %p3104_p0, %p71_p12  ;;  %p2113_p5 = scmp.lt.s32.totalorder %s2484_s14, 2 }
  0x8c   : > { %s3106_s12 = scalar_select %p2735_p4, 1, 0 }
  0x8d   : > { %s3105_s25 = scalar_select %p2731_p2, 1, 0 }
  0x8e   : > { %s2740_s27 = scalar_select %p56_p13, %s2472_s11, %s58_s9  }
  0x8f   : > { %p2742_p9 = por %p278_p7, %p71_p12  ;;  %s359_s17 = sand.u32 1, %s2472_s11  }
  0x90   : > { %s1883_s20 = sshll.u32 %s2480_s13, 7  ;;  %s2749_s22 = sshll.u32 %s359_s17, 3 }
  0x91   : > { %s3107_s28 = scalar_select %p2742_p9, 1, 0 }
  0x92   : > { %s2754_s21 = scalar_lea.hbm %s3072_s0, %s1883_s20  ;;  %s363_s8 = scalar_lea.vmem [#allocation6], %s2749_s22 }
  0x93   : > { %s371_s19 = sshll.u32 %s363_s8, 4  ;;  %p2759_p10 = pnand %p2113_p5, %p2720_p11  ;;  %s2763_s19 = int_to_ptr.vmem [resolvable:$true] %s371_s19 }
  0x94   : > { %s2768_s23 = scalar_lea.hbm %s3073_s1, %s1883_s20  ;;  %s360_s4 = scalar_lea.sflag [#allocation7], %s359_s17 }
  0x95   : > { %s2326_s5 = scalar_lea.hbm %s2754_s21, 128  ;;  %p2328_p1 = pneg %p2759_p10 }
  0x96   : > { %p2327_p8 = scmp.ne.s32.totalorder %s2754_s21, %s2326_s5  ;;  %s2331_s6 = scalar_lea.hbm %s3072_s0, 256 }
  0x97   : > { %p2332_p12 = scmp.lt.u32.totalorder %s2754_s21, %s3072_s0  ;;  %p2333_p6 = scmp.lt.u32.totalorder %s2331_s6, %s2326_s5 }
  0x98   : > { %p2329_p3 = pnand %p2328_p1, %p2327_p8  ;;  %p2335_p0 = scmp.lt.u32.totalorder %s2326_s5, %s2754_s21 }
  0x99   : > { %p2334_p13 = por %p2333_p6, %p2332_p12 }
  0x9a   : > { %p2330_p11 = pneg %p2329_p3 }
  0x9b   : > { %p2336_p7 = por %p2335_p0, %p2334_p13 }
  0x9d   : > { %p2337_p5 = pnand %p2336_p7, %p2330_p11 }
  0x9f   : > { %2340 = shalt.err (!%p2337_p5)
}
  0xa0   : > { %s2341_s17 = scalar_lea.vmem %s2763_s19, 128  ;;  %s2492_s20 = smov [#allocation6]  }
  0xa1   : > { %p2342_p8 = scmp.ne.s32.totalorder %s2763_s19, %s2341_s17  ;;  %s2346_s24 = sshll.u32 %s2492_s20, 4  ;;  %s2347_s24 = int_to_ptr.vmem [resolvable:$false] %s2346_s24 }
  0xa2   : > { %s2348_s7 = scalar_lea.vmem %s2347_s24, 256  ;;  %p2349_p4 = scmp.lt.s32.totalorder %s2763_s19, %s2347_s24 }
  0xa3   : > { %p2344_p3 = pnand %p2342_p8, %p2328_p1  ;;  %p2350_p12 = scmp.lt.s32.totalorder %s2348_s7, %s2341_s17 }
  0xa5   : > { %p2345_p9 = pneg %p2344_p3  ;;  %p2351_p6 = por %p2350_p12, %p2349_p4 }
  0xa7   : > { %p2352_p13 = pnand %p2351_p6, %p2345_p9 }
  0xa9   : > { %2355 = shalt.err (!%p2352_p13)
}
  0xaa   : > { %2101 = dma.hbm_to_vmem [thread:$0]  (!%p2759_p10), %s2754_s21, 128, %s2763_s19, %s360_s4  }
  0xab   : > { %s378_s5 = sand.u32 1, %s2484_s14   ;;  %s382_s6 = scalar_lea.vmem [#allocation9], %s2749_s22 }
  0xac   : > { %s390_s29 = sshll.u32 %s382_s6, 4  ;;  %s379_s18 = scalar_lea.sflag [#allocation10], %s378_s5  ;;  %s391_s29 = int_to_ptr.vmem [resolvable:$true] %s390_s29 }
  0xad   : > { %s2356_s26 = scalar_lea.hbm %s2768_s23, 128  ;;  %s2361_s20 = scalar_lea.hbm %s3073_s1, 256 }
  0xae   : > { %p2357_p4 = scmp.ne.s32.totalorder %s2768_s23, %s2356_s26  ;;  %p2362_p0 = scmp.lt.u32.totalorder %s2768_s23, %s3073_s1 }
  0xaf   : > { %p2363_p7 = scmp.lt.u32.totalorder %s2361_s20, %s2356_s26  ;;  %p2365_p8 = scmp.lt.u32.totalorder %s2356_s26, %s2768_s23 }
  0xb0   : > { %p2359_p9 = pnand %p2357_p4, %p2328_p1 }
  0xb1   : > { %p2364_p5 = por %p2363_p7, %p2362_p0 }
  0xb2   : > { %p2360_p11 = pneg %p2359_p9 }
  0xb3   : > { %p2366_p3 = por %p2365_p8, %p2364_p5 }
  0xb5   : > { %p2367_p12 = pnand %p2366_p3, %p2360_p11 }
  0xb7   : > { %2370 = shalt.err (!%p2367_p12)
}
  0xb8   : > { %s2371_s4 = scalar_lea.vmem %s391_s29, 128  ;;  %s2493_s22 = smov [#allocation9]  }
  0xb9   : > { %p2372_p6 = scmp.ne.s32.totalorder %s391_s29, %s2371_s4  ;;  %s2376_s21 = sshll.u32 %s2493_s22, 4  ;;  %s2377_s21 = int_to_ptr.vmem [resolvable:$false] %s2376_s21 }
  0xba   : > { %s2378_s19 = scalar_lea.vmem %s2377_s21, 256  ;;  %p2379_p9 = scmp.lt.s32.totalorder %s391_s29, %s2377_s21 }
  0xbb   : > { %p2374_p13 = pnand %p2372_p6, %p2328_p1  ;;  %p2380_p2 = scmp.lt.s32.totalorder %s2378_s19, %s2371_s4 }
  0xbd   : > { %p2375_p4 = pneg %p2374_p13  ;;  %p2381_p0 = por %p2380_p2, %p2379_p9 }
  0xbf   : > { %p2382_p7 = pnand %p2381_p0, %p2375_p4 }
  0xc1   : > { %2385 = shalt.err (!%p2382_p7)
}
  0xc2   : > { %2104 = dma.hbm_to_vmem [thread:$0]  (!%p2759_p10), %s2768_s23, 128, %s391_s29, %s379_s18  }
  0xc3   : > { %p3109_p11 = scmp.ne.s32.totalorder %s3095_s16, 0 }
  0xc4   : > { %s2819_s5 = sand.u32 (!%p3109_p11), 1, %s2468_s10   ;;  %p3110_p2 = scmp.ne.s32.totalorder (!%p3109_p11), %s3105_s25, 0 }
  0xc5   : > { %399 = sbr.rel (%p3109_p11) target bundleno = 1878 (0x756), region = 56  ;;  %s2822_s6 = sshll.u32 (!%p3109_p11), %s2819_s5, 3 }
  0xc6   : > { %s402_s26 = scalar_lea.sflag (!%p3109_p11), [#allocation7], %s2819_s5  ;;  %s405_s8 = scalar_lea.vmem (!%p3109_p11), [#allocation6], %s2822_s6 }
  0xcc   : > { %2439 = dma.done.wait (%p3110_p2), %s402_s26, 128  }
  0xcd   : > { %2441 = vsyncadd (%p3110_p2), %s402_s26, 4294967168  ;;  %s410_s16 = sand.u32 1, %s2587_s15   ;;  %s414_s23 = scalar_lea.vmem [#allocation9], %s2822_s6 }
  0xce   : > { %s411_s9 = scalar_lea.sflag [#allocation10], %s410_s16 }
  0xcf   : > { %2443 = dma.done.wait (%p3110_p2), %s411_s9, 128  }
  0xd0   : > { %2445 = vsyncadd (%p3110_p2), %s411_s9, 4294967168  ;;  %p3111_p10 = scmp.eq.s32.totalorder %s2587_s15, 0 }
  0xd2   : > { %2447 = dma.done.wait (%p3111_p10), [#allocation10], 512   ;;  %p3112_p1 = pmov %p3111_p10 }
  0xd4   : > { %2449 = vsyncadd (%p3112_p1), [#allocation10], 4294966784  ;;  %p3113_p5 = pmov %p3112_p1 }
  0xd5   : > { %p3114_p8 = pmov %p3112_p1 }
  0xd6   : > { %2451 = dma.done.wait (%p3113_p5), [#allocation13], 1024  }
  0xd7   : > { %2453 = vsyncadd (%p3114_p8), [#allocation13], 4294966272  ;;  %p3115_p3 = pmov %p3112_p1 }
  0xd8   : > { %p3116_p12 = pmov %p3112_p1 }
  0xd9   : > { %2455 = dma.done.wait (%p3115_p3), [#allocation16], 512  }
  0xda   : > { %2457 = vsyncadd (%p3116_p12), [#allocation16], 4294966784  ;;  %vm475_vm0 = vcmask 261120   ;;  %v2848_v0 = vld [vmem:[%s414_s23] sm:$0xff]  ;;  %v2850_v1 = vld [vmem:[%s405_s8] sm:$0xff]  ;;  %v2494_v11 = vmov 0.0|0.0  }
  0xdb   : > { %v623_v2 = vsel %vm475_vm0, %v2848_v0, 0.0  ;;  %v476_v3 = vsel %vm475_vm0, %v2850_v1, 0.0  ;;  %v626_v4 = vmul.f32 %v2848_v0, %v2848_v0  ;;  %v479_v5 = vmul.f32 %v2850_v1, %v2850_v1  ;;  %v508_v8 = vld [vmem:[#allocation11] sm:$0xff]  ;;  %v509_v9 = vld [vmem:[#allocation11 + $0x8] sm:$0xff]  ;;  %2039 = vmatprep.subr.bf16.mxu0 %v2494_v11  ;;  %2045 = vmatprep.subr.bf16.mxu1 %v2494_v11  ;;  %v510_v14 = vld [vmem:[#allocation11 + $0x10] sm:$0xff]  ;;  %s2497_s17 = smov 120  }
  0xdc   : > { %624 = vadd.xlane.f32.xlu1 %v623_v2  ;;  %477 = vadd.xlane.f32.xlu0 %v476_v3  ;;  %v655_v10 = vld [vmem:[#allocation12] sm:$0xff]  ;;  %v2040_v12 = vpack.c.bf16 %v509_v9, %v508_v8  ;;  %v656_v13 = vld [vmem:[#allocation12 + $0x8] sm:$0xff]  ;;  %v511_v15 = vld [vmem:[#allocation11 + $0x18] sm:$0xff]  ;;  %vm2495_vm1 = vmmov 0   ;;  %v2496_v19 = vmov 0.0   ;;  %vm596_vm2 = vcmask 64512  }
  0xdd   : > { %v627_v6 = vsel %vm475_vm0, %v626_v4, 0.0  ;;  %v480_v7 = vsel %vm475_vm0, %v479_v5, 0.0  ;;  %v2046_v16 = vpack.c.bf16 %v656_v13, %v655_v10  ;;  %v657_v17 = vld [vmem:[#allocation12 + $0x10] sm:$0xff]  ;;  %v658_v18 = vld [vmem:[#allocation12 + $0x18] sm:$0xff]  ;;  %1963 = vmatprep.mubr.msk.f32.mxu0 %vm2495_vm1, %v2496_v19  ;;  %1974 = vmatprep.mubr.msk.f32.mxu1 %vm2495_vm1, %v2496_v19  ;;  %v2043_v20 = vpack.c.bf16 %v511_v15, %v510_v14  ;;  %v1894_v41 = vld [vmem:[%s3074_s2] ss:$0 sm:$0xff] }
  0xde   : > { %2041 = vmatpush3.bf16.msra.mxu0 %v2040_v12  ;;  %v2049_v21 = vpack.c.bf16 %v658_v18, %v657_v17  ;;  %v1895_v45 = vld [vmem:[%s3075_s3] ss:$0 sm:$0xff]  ;;  %v733_v47 = vld [vmem:[#allocation14 + $0x8] sm:$0xff]  ;;  %v734_v53 = vld [vmem:[#allocation14 + $0x10] sm:$0xff]  ;;  %610 = vst.msk [vmem:[#allocation5] sm:$0xff] %vm596_vm2, %v2496_v19  ;;  %s2498_s20 = smov 112   ;;  %v1129_v10 = vlaneseq }
  0xdf   : > { %2047 = vmatpush3.bf16.msra.mxu1 %v2046_v16  ;;  %2042 = vmatprep.subr.bf16.mxu0 %v2494_v11  ;;  %v732_v46 = vld [vmem:[#allocation14] sm:$0xff]  ;;  %v735_v54 = vld [vmem:[#allocation14 + $0x18] sm:$0xff]  ;;  %611 = vst.msk [vmem:[#allocation5 + $0x8] sm:$0xff] %vm596_vm2, %v2496_v19  ;;  %612 = vst.msk [vmem:[#allocation5 + $0x10] sm:$0xff] %vm596_vm2, %v2496_v19  ;;  %s2499_s24 = smov 104   ;;  %vm601_vm4 = vcmask 7168  }
  0xe0   : > { %628 = vadd.xlane.f32.xlu1 %v627_v6  ;;  %481 = vadd.xlane.f32.xlu0 %v480_v7  ;;  %v2052_v51 = vpack.c.bf16 %v733_v47, %v732_v46  ;;  %v2055_v55 = vpack.c.bf16 %v735_v54, %v734_v53  ;;  %613 = vst.msk [vmem:[#allocation5 + $0x18] sm:$0xff] %vm596_vm2, %v2496_v19  ;;  %v1130_v12 = vshrl.u32 %v1129_v10, 7  ;;  %v1134_v13 = vand.u32 127, %v1129_v10  ;;  %s2502_s7 = smov 8   ;;  %s2503_s4 = smov 16  }
  0xe1   : > { %2048 = vmatprep.subr.bf16.mxu1 %v2494_v11  ;;  %v2500_v14 = vmov -1e+30   ;;  %606 = vst.msk [vmem:[#allocation4] sm:$0xff] %vm601_vm4, %v2496_v19  ;;  %607 = vst.msk [vmem:[#allocation4 + $0x8] sm:$0xff] %vm601_vm4, %v2496_v19  ;;  %s2504_s22 = smov 24   ;;  %s3117_s21 = sld [smem:[#allocation24_spill]] }
  0xe2   : > { %2044 = vmatpush3.bf16.msra.mxu0 %v2043_v20  ;;  %vm1137_vm3 = vcmp.gt.s32.totalorder %v1134_v13, %v1130_v12  ;;  %602 = vst.msk [vmem:[#allocation3] sm:$0xff] %vm601_vm4, %v2500_v14  ;;  %603 = vst.msk [vmem:[#allocation3 + $0x8] sm:$0xff] %vm601_vm4, %v2500_v14  ;;  %v2501_v20 = vmov 0   ;;  %vm1622_vm5 = vcmask 130048   ;;  %vm1624_vm6 = vcmask 195584   ;;  %s3118_s8 = sld [smem:[#allocation30_spill]] }
  0xe3   : > { %2050 = vmatpush3.bf16.msra.mxu1 %v2049_v21  ;;  %2051 = vmatprep.subr.bf16.mxu0 %v2494_v11  ;;  %604 = vst.msk [vmem:[#allocation3 + $0x10] sm:$0xff] %vm601_vm4, %v2500_v14  ;;  %605 = vst.msk [vmem:[#allocation3 + $0x18] sm:$0xff] %vm601_vm4, %v2500_v14  ;;  %s469_s9 = scalar_lea.vmem [#allocation17], %s2822_s6  ;;  %s3119_s29 = sld [smem:[#allocation31_spill]] }
  0xe4   : > { %1988 = vmatprep.subr.mxu1 %v2496_v19  ;;  %608 = vst.msk [vmem:[#allocation4 + $0x10] sm:$0xff] %vm601_vm4, %v2496_v19  ;;  %609 = vst.msk [vmem:[#allocation4 + $0x18] sm:$0xff] %vm601_vm4, %v2496_v19  ;;  %2184 = vset.pattern.permute.xlu0 %v2501_v20  ;;  %s1729_s23 = sshll.u32 %s469_s9, 4  ;;  %p3120_p13 = scmp.ne.s32.totalorder %s3106_s12, 0  ;;  %s3024_s23 = int_to_ptr.vmem [resolvable:$true] %s1729_s23 }
  0xe5   : > { %2185 = vset.pattern.permute.xlu1 %v2501_v20  ;;  %s2505_s6 = smov [#allocation17]  }
  0xe7   : > { %s1916_s16 = sshll.u32 %s3117_s21, 7 }
  0xe9   : > { %s3022_s18 = scalar_lea.hbm %s3119_s29, %s1916_s16 }
 0x169   : > { %v625_v22 = vpop.xlane.xlu1 %624  ;;  %v478_v23 = vpop.xlane.xlu0 %477 }
 0x16a   : > { %v630_v24 = vmul.f32 0.03125, %v625_v22  ;;  %v483_v25 = vmul.f32 0.03125, %v478_v23 }
 0x16c   : > { %v632_v26 = vmul.f32 %v630_v24, %v630_v24  ;;  %v485_v29 = vmul.f32 %v483_v25, %v483_v25  ;;  %v635_v38 = vsub.f32 %v2848_v0, %v630_v24  ;;  %v488_v40 = vsub.f32 %v2850_v1, %v483_v25 }
 0x16d   : > { %v629_v27 = vpop.xlane.xlu1 %628  ;;  %v482_v28 = vpop.xlane.xlu0 %481 }
 0x16e   : > { %v631_v30 = vmul.f32 0.03125, %v629_v27  ;;  %v484_v31 = vmul.f32 0.03125, %v482_v28 }
 0x170   : > { %v633_v32 = vsub.f32 %v631_v30, %v632_v26  ;;  %v486_v33 = vsub.f32 %v484_v31, %v485_v29 }
 0x172   : > { %v634_v34 = vmax.f32 %v633_v32, 0.0  ;;  %v487_v35 = vmax.f32 %v486_v33, 0.0  ;;  %v2953_v33 = vld [vmem:[#allocation3] sm:$0xff] }
 0x174   : > { %v636_v36 = vadd.f32 1e-05, %v634_v34  ;;  %v489_v37 = vadd.f32 1e-05, %v487_v35 }
 0x176   : > { %2186 = vrsqrt.f32 %v636_v36 }
 0x177   : > { %2188 = vrsqrt.f32 %v489_v37  ;;  %v2963_v37 = vld [vmem:[#allocation3 + $0x8] sm:$0xff] }
 0x180   : > { %v2187_v39 = vpop.eup %2186 }
 0x181   : > { %v2189_v42 = vpop.eup %2188  ;;  %v638_v43 = vmul.f32 %v2187_v39, %v635_v38 }
 0x182   : > { %v491_v44 = vmul.f32 %v2189_v42, %v488_v40  ;;  %v2966_v40 = vld [vmem:[#allocation3 + $0x10] sm:$0xff] }
 0x183   : > { %v646_v48 = vmul.f32 %v1894_v41, %v638_v43 }
 0x184   : > { %v499_v49 = vmul.f32 %v1894_v41, %v491_v44  ;;  %v1147_v44 = vld [vmem:[#allocation3 + $0x18] sm:$0xff] }
 0x185   : > { %v654_v50 = vadd.f32 %v1895_v45, %v646_v48 }
 0x186   : > { %v507_v52 = vadd.f32 %v1895_v45, %v499_v49 }
 0x187   : > { %1975 = vmatmul.mubr.msk.f32.vlgmr.msra.gmra.mrb[0].mxu1 %vm475_vm0, %v654_v50 }
 0x188   : > { %1964 = vmatmul.mubr.msk.f32.vlgmr.msra.gmra.mrb[0].mxu0 %vm475_vm0, %v507_v52  ;;  %1990 = vmatprep.mubr.msk.f32.mxu1 %vm2495_vm1, %v2496_v19 }
 0x189   : > { %2053 = vmatpush3.bf16.msra.mxu0 %v2052_v51  ;;  %1985 = vmatprep.mubr.msk.f32.mxu0 %vm2495_vm1, %v2496_v19 }
 0x18a   : > { %2054 = vmatprep.subr.bf16.mxu0 %v2494_v11 }
 0x18d   : > { %2056 = vmatpush3.bf16.msra.mxu0 %v2055_v55 }
 0x18e   : > { %2008 = vmatprep.subr.mxu0 %v2496_v19 }
 0x190   : > { %1986 = vmatmul.mubr.msk.f32.vlgmr.msra.gmra.mrb[2].mxu0 %vm475_vm0, %v654_v50 }
 0x191   : > { %2010 = vmatprep.mubr.msk.f32.mxu0 %vm2495_vm1, %v2496_v19 }
 0x25a   : > { %v728_v56 = vpop.f32.mrb[0].mxu1 }
 0x25b   : > { %v581_v57 = vpop.f32.mrb[0].mxu0  ;;  %807 = vrot.lane.b32.xlu1 %v728_v56, %s2497_s17  ;;  %v1976_v58 = vpop.f32.mrb[1].mxu1  ;;  %1989 = vmatpush3.xpose.msk.msra.mxu1 %vm596_vm2, %v728_v56 }
 0x25c   : > { %v585_v59 = vmul.f32 0.35355338, %v581_v57  ;;  %v1965_v60 = vpop.f32.mrb[1].mxu0  ;;  %1993 = vmatprep.subr.mxu1 %v2496_v19 }
 0x25e   : > { %597 = vst.msk [vmem:[#allocation2] sm:$0xff] %vm596_vm2, %v585_v59  ;;  %587 = vrot.lane.b32.xlu0 %v585_v59, %s2497_s17 }
 0x25f   : > { %590 = vrot.lane.b32.xlu1 %v585_v59, %s2498_s20 }
 0x262   : > { %809 = vrot.lane.b32.xlu0 %v728_v56, %s2498_s20 }
 0x263   : > { %v2906_v61 = vpop.f32.mrb[2].mxu0  ;;  %593 = vrot.lane.b32.xlu1 %v585_v59, %s2499_s24 }
 0x264   : > { %v1987_v62 = vpop.f32.mrb[3].mxu0  ;;  %2009 = vmatpush3.msra.mxu0 %v2906_v61 }
 0x265   : > { %v823_v63 = vld [vmem:[#allocation2] sm:$0xff]  ;;  %2018 = vmatprep.subr.mxu0 %v2496_v19 }
 0x266   : > { %1991 = vmatmul.mubr.msk.f32.vlgmr.msra.gmra.mrb[2].mxu1 %vm596_vm2, %v823_v63 }
 0x267   : > { %811 = vrot.lane.b32.xlu1 %v728_v56, %s2499_s24  ;;  %1995 = vmatprep.mubr.msk.f32.mxu1 %vm2495_vm1, %v2496_v19 }
 0x2cd   : > { %v808_v0 = vpop.permute.xlu1 %807 }
 0x2ce   : > { %1994 = vmatpush3.xpose.msk.msra.mxu1 %vm596_vm2, %v808_v0 }
 0x2cf   : > { %1998 = vmatprep.subr.mxu1 %v2496_v19 }
 0x2d0   : > { %v588_v2 = vpop.permute.xlu0 %587 }
 0x2d1   : > { %598 = vst.msk [vmem:[#allocation2 + $0x8] sm:$0xff] %vm596_vm2, %v588_v2  ;;  %v591_v3 = vpop.permute.xlu1 %590 }
 0x2d2   : > { %599 = vst.msk [vmem:[#allocation2 + $0x10] sm:$0xff] %vm596_vm2, %v591_v3 }
 0x2d4   : > { %v810_v6 = vpop.permute.xlu0 %809 }
 0x2d5   : > { %v594_v4 = vpop.permute.xlu1 %593 }
 0x2d6   : > { %600 = vst.msk [vmem:[#allocation2 + $0x18] sm:$0xff] %vm596_vm2, %v594_v4 }
 0x2d8   : > { %v824_v5 = vld [vmem:[#allocation2 + $0x8] sm:$0xff] }
 0x2d9   : > { %1996 = vmatmul.mubr.msk.f32.vlgmr.msra.gmra.mrb[4].mxu1 %vm596_vm2, %v824_v5  ;;  %v825_v7 = vld [vmem:[#allocation2 + $0x10] sm:$0xff]  ;;  %v812_v8 = vpop.permute.xlu1 %811 }
 0x2da   : > { %1999 = vmatpush3.xpose.msk.msra.mxu1 %vm596_vm2, %v810_v6  ;;  %2000 = vmatprep.mubr.msk.f32.mxu1 %vm2495_vm1, %v2496_v19 }
 0x2db   : > { %2003 = vmatprep.subr.mxu1 %v2496_v19 }
 0x2dd   : > { %2001 = vmatmul.mubr.msk.f32.vlgmr.msra.gmra.mrb[6].mxu1 %vm596_vm2, %v825_v7  ;;  %v826_v9 = vld [vmem:[#allocation2 + $0x18] sm:$0xff] }
 0x2de   : > { %2004 = vmatpush3.xpose.msk.msra.mxu1 %vm596_vm2, %v812_v8  ;;  %2005 = vmatprep.mubr.msk.f32.mxu1 %vm2495_vm1, %v2496_v19 }
 0x2df   : > { %2013 = vmatprep.subr.mxu1 %v2496_v19 }
 0x2e1   : > { %2006 = vmatmul.mubr.msk.f32.vlgmr.msra.gmra.mrb[8].mxu1 %vm596_vm2, %v826_v9 }
 0x2e2   : > { %2015 = vmatprep.mubr.msk.f32.mxu1 %vm2495_vm1, %v2496_v19 }
 0x339   : > { %v899_v15 = vpop.f32.mrb[2].mxu1 }
 0x33a   : > { %v1140_v16 = vsel %vm1137_vm3, -1e+30, %v899_v15  ;;  %v1992_v17 = vpop.f32.mrb[3].mxu1 }
 0x33b   : > { %v1148_v18 = vsel %vm596_vm2, %v1140_v16, -inf }
 0x33c   : > { %1149 = vmax.xlane.f32.xlu0 %v1148_v18  ;;  %v1209_v18 = vld [vmem:[#allocation4 + $0x8] sm:$0xff] }
 0x3ac   : > { %v974_v21 = vpop.f32.mrb[4].mxu1 }
 0x3ad   : > { %v1141_v22 = vsel %vm1137_vm3, -1e+30, %v974_v21  ;;  %v1997_v23 = vpop.f32.mrb[5].mxu1 }
 0x3ae   : > { %v1151_v24 = vsel %vm596_vm2, %v1141_v22, -inf }
 0x3af   : > { %1152 = vmax.xlane.f32.xlu1 %v1151_v24 }
 0x3b0   : > { %v1049_v25 = vpop.f32.mrb[6].mxu1 }
 0x3b1   : > { %v1142_v26 = vsel %vm1137_vm3, -1e+30, %v1049_v25  ;;  %v2002_v27 = vpop.f32.mrb[7].mxu1 }
 0x3b2   : > { %v1154_v28 = vsel %vm596_vm2, %v1142_v26, -inf  ;;  %v1208_v27 = vld [vmem:[#allocation4] sm:$0xff] }
 0x3b3   : > { %1155 = vmax.xlane.f32.xlu0 %v1154_v28  ;;  %v1211_v28 = vld [vmem:[#allocation4 + $0x18] sm:$0xff] }
 0x3b4   : > { %v1124_v29 = vpop.f32.mrb[8].mxu1 }
 0x3b5   : > { %v1143_v30 = vsel %vm1137_vm3, -1e+30, %v1124_v29  ;;  %v2007_v31 = vpop.f32.mrb[9].mxu1 }
 0x3b6   : > { %v1157_v32 = vsel %vm596_vm2, %v1143_v30, -inf }
 0x3b7   : > { %1158 = vmax.xlane.f32.xlu0 %v1157_v32 }
 0x3c9   : > { %v1150_v34 = vpop.xlane.xlu0 %1149 }
 0x3ca   : > { %v2956_v35 = vmax.f32 %v2953_v33, %v1150_v34 }
 0x3cc   : > { %v1164_v36 = vsub.f32 %v2953_v33, %v2956_v35  ;;  %1565 = vst.msk [vmem:[#allocation3] sm:$0xff] %vm601_vm4, %v2956_v35 }
 0x3cd   : > { %1178 = vperm.xlu0 %2184, %v2956_v35  }
 0x3ce   : > { %v1168_v17 = vmul.f32 1.442695, %v1164_v36 }
 0x43c   : > { %v1153_v38 = vpop.xlane.xlu1 %1152 }
 0x43d   : > { %v1161_v39 = vmax.f32 %v2963_v37, %v1153_v38 }
 0x43f   : > { %v1165_v41 = vsub.f32 %v2963_v37, %v1161_v39  ;;  %1566 = vst.msk [vmem:[#allocation3 + $0x8] sm:$0xff] %vm601_vm4, %v1161_v39  ;;  %1183 = vperm.xlu1 %2185, %v1161_v39  }
 0x440   : > { %v1156_v42 = vpop.xlane.xlu0 %1155 }
 0x441   : > { %v1162_v43 = vmax.f32 %v2966_v40, %v1156_v42  ;;  %v1170_v9 = vmul.f32 1.442695, %v1165_v41 }
 0x443   : > { %v1166_v45 = vsub.f32 %v2966_v40, %v1162_v43  ;;  %1567 = vst.msk [vmem:[#allocation3 + $0x10] sm:$0xff] %vm601_vm4, %v1162_v43  ;;  %1188 = vperm.xlu1 %2185, %v1162_v43  }
 0x444   : > { %v1159_v46 = vpop.xlane.xlu0 %1158 }
 0x445   : > { %v1163_v47 = vmax.f32 %v1147_v44, %v1159_v46  ;;  %v1172_v12 = vmul.f32 1.442695, %v1166_v45 }
 0x447   : > { %v1167_v48 = vsub.f32 %v1147_v44, %v1163_v47  ;;  %1568 = vst.msk [vmem:[#allocation3 + $0x18] sm:$0xff] %vm601_vm4, %v1163_v47  ;;  %1193 = vperm.xlu1 %2185, %v1163_v47   ;;  %v1238_v44 = vld [vmem:[#allocation5 + $0x8] sm:$0xff]  ;;  %v1239_v47 = vld [vmem:[#allocation5 + $0x10] sm:$0xff] }
 0x449   : > { %v1174_v10 = vmul.f32 1.442695, %v1167_v48 }
 0x44b   : > { %814 = vrot.lane.b32.xlu1 %v2906_v61, %s2497_s17  ;;  %s1715_s17 = scalar_lea.sflag [#allocation8], %s2819_s5 }
 0x44c   : > { %v1179_v49 = vpop.permute.xlu0 %1178 }
 0x44d   : > { %v1196_v50 = vsub.f32 %v1140_v16, %v1179_v49 }
 0x44f   : > { %v1200_v51 = vmul.f32 1.442695, %v1196_v50  ;;  %817 = vrot.lane.b32.xlu1 %v2906_v61, %s2498_s20  ;;  %s2386_s20 = scalar_lea.vmem %s3024_s23, 128 }
 0x450   : > { %p2387_p6 = scmp.ne.s32.totalorder %s3024_s23, %s2386_s20 }
 0x451   : > { %2190 = vpow2.f32 %v1200_v51 }
 0x452   : > { %p2388_p4 = pnand %p2387_p6, %p3120_p13 }
 0x453   : > { %820 = vrot.lane.b32.xlu1 %v2906_v61, %s2499_s24  ;;  %s2390_s24 = sshll.u32 %s2505_s6, 4  ;;  %s2391_s24 = int_to_ptr.vmem [resolvable:$false] %s2390_s24 }
 0x454   : > { %p2389_p9 = pneg %p2388_p4  ;;  %p2393_p0 = scmp.lt.s32.totalorder %s3024_s23, %s2391_s24 }
 0x45b   : > { %v2191_v52 = vpop.eup %2190 }
 0x45c   : > { %2011 = vmatmul.mubr.msk.f32.vlgmr.msra.gmra.mrb[4].mxu0 %vm596_vm2, %v2191_v52  ;;  %v1216_v7 = vsel %vm596_vm2, %v2191_v52, 0.0 }
 0x45d   : > { %2020 = vmatprep.mubr.msk.f32.mxu0 %vm2495_vm1, %v2496_v19 }
 0x4be   : > { %v1184_v53 = vpop.permute.xlu1 %1183 }
 0x4bf   : > { %v1197_v54 = vsub.f32 %v1141_v22, %v1184_v53  ;;  %v1210_v22 = vld [vmem:[#allocation4 + $0x10] sm:$0xff]  ;;  %v1240_v53 = vld [vmem:[#allocation5 + $0x18] sm:$0xff] }
 0x4c1   : > { %v1202_v55 = vmul.f32 1.442695, %v1197_v54 }
 0x4c2   : > { %v1189_v56 = vpop.permute.xlu1 %1188 }
 0x4c3   : > { %2192 = vpow2.f32 %v1202_v55  ;;  %v1198_v57 = vsub.f32 %v1142_v26, %v1189_v56 }
 0x4c5   : > { %v1204_v58 = vmul.f32 1.442695, %v1198_v57 }
 0x4c6   : > { %v1194_v59 = vpop.permute.xlu1 %1193 }
 0x4c7   : > { %2194 = vpow2.f32 %v1204_v58  ;;  %v1199_v60 = vsub.f32 %v1143_v30, %v1194_v59 }
 0x4c9   : > { %v1206_v62 = vmul.f32 1.442695, %v1199_v60 }
 0x4ca   : > { %v815_v63 = vpop.permute.xlu1 %814 }
 0x4cb   : > { %2196 = vpow2.f32 %v1206_v62  ;;  %2014 = vmatpush3.msra.mxu1 %v815_v63  ;;  %v1626_v63 = vld [vmem:[#allocation15] sm:$0xff] }
 0x4cc   : > { %2023 = vmatprep.subr.mxu1 %v2496_v19  ;;  %2198 = vpow2.f32 %v1170_v9 }
 0x4cd   : > { %v2193_v61 = vpop.eup %2192  ;;  %2200 = vpow2.f32 %v1174_v10 }
 0x4ce   : > { %2016 = vmatmul.mubr.msk.f32.vlgmr.msra.gmra.mrb[10].mxu1 %vm596_vm2, %v2193_v61  ;;  %v818_v0 = vpop.permute.xlu1 %817  ;;  %v1219_v2 = vsel %vm596_vm2, %v2193_v61, 0.0  ;;  %2202 = vpow2.f32 %v1172_v12  ;;  %v1627_v61 = vld [vmem:[#allocation15 + $0x8] sm:$0xff]  ;;  %v1237_v12 = vld [vmem:[#allocation5] sm:$0xff] }
 0x4cf   : > { %1220 = vadd.xlane.f32.xlu1 %v1219_v2  ;;  %2019 = vmatpush3.msra.mxu0 %v818_v0  ;;  %2204 = vpow2.f32 %v1168_v17  ;;  %v2058_v0 = vpack.c.bf16 %v1627_v61, %v1626_v63  ;;  %v1628_v2 = vld [vmem:[#allocation15 + $0x10] sm:$0xff] }
 0x4d0   : > { %2025 = vmatprep.mubr.msk.f32.mxu1 %vm2495_vm1, %v2496_v19  ;;  %2057 = vmatprep.subr.bf16.mxu0 %v2494_v11 }
 0x4d1   : > { %v2195_v3 = vpop.eup %2194 }
 0x4d2   : > { %v821_v4 = vpop.permute.xlu1 %820  ;;  %2021 = vmatmul.mubr.msk.f32.vlgmr.msra.gmra.mrb[6].mxu0 %vm596_vm2, %v2195_v3  ;;  %v1222_v5 = vsel %vm596_vm2, %v2195_v3, 0.0  ;;  %v1629_v3 = vld [vmem:[#allocation15 + $0x18] sm:$0xff] }
 0x4d3   : > { %1223 = vadd.xlane.f32.xlu0 %v1222_v5  ;;  %2024 = vmatpush3.msra.mxu1 %v821_v4  ;;  %v2061_v4 = vpack.c.bf16 %v1629_v3, %v1628_v2 }
 0x4d4   : > { %2036 = vmatprep.mubr.msk.f32.mxu0 %vm2495_vm1, %v2496_v19  ;;  %2059 = vmatpush3.bf16.msra.mxu0 %v2058_v0 }
 0x4d5   : > { %v2197_v6 = vpop.eup %2196  ;;  %2060 = vmatprep.subr.bf16.mxu0 %v2494_v11 }
 0x4d6   : > { %2026 = vmatmul.mubr.msk.f32.vlgmr.msra.gmra.mrb[12].mxu1 %vm596_vm2, %v2197_v6  ;;  %v1225_v8 = vsel %vm596_vm2, %v2197_v6, 0.0  ;;  %v2199_v13 = vpop.eup %2198 }
 0x4d7   : > { %1217 = vadd.xlane.f32.xlu0 %v1216_v7  ;;  %1226 = vadd.xlane.f32.xlu1 %v1225_v8  ;;  %v2201_v14 = vpop.eup %2200  ;;  %v1213_v20 = vmul.f32 %v2199_v13, %v1209_v18 }
 0x4d8   : > { %v2203_v15 = vpop.eup %2202  ;;  %v1215_v31 = vmul.f32 %v2201_v14, %v1211_v28  ;;  %2062 = vmatpush3.bf16.msra.mxu0 %v2061_v4 }
 0x4d9   : > { %v1214_v24 = vmul.f32 %v2203_v15, %v1210_v22  ;;  %v2205_v25 = vpop.eup %2204 }
 0x4da   : > { %v1212_v30 = vmul.f32 %v2205_v25, %v1208_v27 }
 0x4e8   : > { %1248 = vperm.xlu1 %2185, %v2199_v13  }
 0x4ec   : > { %1258 = vperm.xlu1 %2185, %v2201_v14  }
 0x4ed   : > { %1253 = vperm.xlu0 %2184, %v2203_v15  }
 0x52f   : > { %v2996_v19 = vpop.f32.mrb[4].mxu0 }
 0x530   : > { %v2012_v16 = vpop.f32.mrb[5].mxu0 }
 0x55c   : > { %v1221_v21 = vpop.xlane.xlu1 %1220 }
 0x55d   : > { %v1229_v23 = vadd.f32 %v1221_v21, %v1213_v20 }
 0x55f   : > { %1234 = vst.msk [vmem:[#allocation4 + $0x8] sm:$0xff] %vm601_vm4, %v1229_v23 }
 0x560   : > { %v1224_v26 = vpop.xlane.xlu0 %1223 }
 0x561   : > { %v1230_v29 = vadd.f32 %v1224_v26, %v1214_v24 }
 0x563   : > { %1235 = vst.msk [vmem:[#allocation4 + $0x10] sm:$0xff] %vm601_vm4, %v1230_v29 }
 0x564   : > { %v1218_v32 = vpop.xlane.xlu0 %1217  ;;  %v1227_v33 = vpop.xlane.xlu1 %1226 }
 0x565   : > { %v1228_v34 = vadd.f32 %v1218_v32, %v1212_v30  ;;  %v1231_v35 = vadd.f32 %v1227_v33, %v1215_v31 }
 0x566   : > { %v1577_v36 = vld [vmem:[#allocation4 + $0x8] sm:$0xff] }
 0x567   : > { %1233 = vst.msk [vmem:[#allocation4] sm:$0xff] %vm601_vm4, %v1228_v34  ;;  %1236 = vst.msk [vmem:[#allocation4 + $0x18] sm:$0xff] %vm601_vm4, %v1231_v35  ;;  %2206 = vrcp.f32 %v1577_v36 }
 0x568   : > { %v1249_v45 = vpop.permute.xlu1 %1248 }
 0x569   : > { %v1262_v46 = vmul.f32 %v1249_v45, %v1238_v44 }
 0x56a   : > { %v1578_v37 = vld [vmem:[#allocation4 + $0x10] sm:$0xff] }
 0x56b   : > { %2208 = vrcp.f32 %v1578_v37 }
 0x56c   : > { %v1254_v48 = vpop.permute.xlu0 %1253  ;;  %v1259_v54 = vpop.permute.xlu1 %1258 }
 0x56d   : > { %v1263_v52 = vmul.f32 %v1254_v48, %v1239_v47  ;;  %v1264_v58 = vmul.f32 %v1259_v54, %v1240_v53 }
 0x56e   : > { %v1579_v38 = vld [vmem:[#allocation4 + $0x18] sm:$0xff]  ;;  %v1576_v39 = vld [vmem:[#allocation4] sm:$0xff] }
 0x56f   : > { %2210 = vrcp.f32 %v1579_v38 }
 0x570   : > { %2212 = vrcp.f32 %v1576_v39 }
 0x571   : > { %v2207_v40 = vpop.eup %2206 }
 0x572   : > { %1591 = vperm.xlu1 %2185, %v2207_v40  }
 0x575   : > { %v2209_v41 = vpop.eup %2208 }
 0x576   : > { %1596 = vperm.xlu0 %2184, %v2209_v41  }
 0x579   : > { %v2211_v42 = vpop.eup %2210 }
 0x57a   : > { %1243 = vperm.xlu0 %2184, %v2205_v25   ;;  %1601 = vperm.xlu1 %2185, %v2211_v42   ;;  %v2213_v43 = vpop.eup %2212 }
 0x57e   : > { %1586 = vperm.xlu1 %2185, %v2213_v43  }
 0x5a1   : > { %v1407_v49 = vpop.f32.mrb[10].mxu1 }
 0x5a2   : > { %v1558_v50 = vadd.f32 %v1407_v49, %v1262_v46  ;;  %v2017_v51 = vpop.f32.mrb[11].mxu1 }
 0x5a4   : > { %1562 = vst.msk [vmem:[#allocation5 + $0x8] sm:$0xff] %vm596_vm2, %v1558_v50 }
 0x5a5   : > { %v1480_v55 = vpop.f32.mrb[6].mxu0 }
 0x5a6   : > { %v1559_v56 = vadd.f32 %v1480_v55, %v1263_v52  ;;  %v2022_v57 = vpop.f32.mrb[7].mxu0 }
 0x5a8   : > { %1563 = vst.msk [vmem:[#allocation5 + $0x10] sm:$0xff] %vm596_vm2, %v1559_v56 }
 0x5a9   : > { %v1553_v59 = vpop.f32.mrb[12].mxu1 }
 0x5aa   : > { %v1560_v60 = vadd.f32 %v1553_v59, %v1264_v58  ;;  %v2027_v62 = vpop.f32.mrb[13].mxu1 }
 0x5ab   : > { %v1573_v5 = vld [vmem:[#allocation5 + $0x8] sm:$0xff] }
 0x5ac   : > { %1564 = vst.msk [vmem:[#allocation5 + $0x18] sm:$0xff] %vm596_vm2, %v1560_v60 }
 0x5af   : > { %v1574_v9 = vld [vmem:[#allocation5 + $0x10] sm:$0xff] }
 0x5b3   : > { %v1575_v14 = vld [vmem:[#allocation5 + $0x18] sm:$0xff] }
 0x5f1   : > { %v1592_v6 = vpop.permute.xlu1 %1591 }
 0x5f2   : > { %v1605_v7 = vmul.f32 %v1592_v6, %v1573_v5 }
 0x5f4   : > { %1609 = vrot.lane.b32.xlu0 %v1605_v7, %s2502_s7  ;;  %s2392_s7 = scalar_lea.vmem %s2391_s24, 256 }
 0x5f5   : > { %v1597_v8 = vpop.permute.xlu0 %1596  ;;  %p2394_p7 = scmp.lt.s32.totalorder %s2392_s7, %s2386_s20 }
 0x5f6   : > { %v1606_v10 = vmul.f32 %v1597_v8, %v1574_v9 }
 0x5f7   : > { %p2395_p11 = por %p2394_p7, %p2393_p0 }
 0x5f8   : > { %1613 = vrot.lane.b32.xlu1 %v1606_v10, %s2503_s4 }
 0x5f9   : > { %v1244_v13 = vpop.permute.xlu0 %1243  ;;  %v1602_v15 = vpop.permute.xlu1 %1601  ;;  %p2396_p2 = pnand %p2395_p11, %p2389_p9 }
 0x5fa   : > { %v1261_v16 = vmul.f32 %v1244_v13, %v1237_v12  ;;  %v1607_v11 = vmul.f32 %v1602_v15, %v1575_v14 }
 0x5fc   : > { %v1557_v17 = vadd.f32 %v2996_v19, %v1261_v16  ;;  %1617 = vrot.lane.b32.xlu0 %v1607_v11, %s2504_s22  ;;  %v1913_v19 = vld [vmem:[%s3118_s8] ss:$0 sm:$0xff] }
 0x5fd   : > { %v1587_v18 = vpop.permute.xlu1 %1586 }
 0x5fe   : > { %1561 = vst.msk [vmem:[#allocation5] sm:$0xff] %vm596_vm2, %v1557_v17 }
 0x605   : > { %v1572_v20 = vld [vmem:[#allocation5] sm:$0xff] }
 0x606   : > { %v1604_v22 = vmul.f32 %v1587_v18, %v1572_v20 }
 0x666   : > { %v1610_v21 = vpop.permute.xlu0 %1609 }
 0x667   : > { %v1621_v24 = vsel %vm596_vm2, %v1604_v22, %v1610_v21 }
 0x66a   : > { %v1614_v23 = vpop.permute.xlu1 %1613 }
 0x66b   : > { %v1623_v25 = vsel %vm1622_vm5, %v1621_v24, %v1614_v23 }
 0x66e   : > { %v1618_v26 = vpop.permute.xlu0 %1617 }
 0x66f   : > { %v1625_v27 = vsel %vm1624_vm6, %v1623_v25, %v1618_v26 }
 0x670   : > { %2037 = vmatmul.mubr.msk.f32.vlgmr.msra.gmra.mrb[8].mxu0 %vm475_vm0, %v1625_v27 }
 0x743   : > { %v1707_v28 = vpop.f32.mrb[8].mxu0 }
 0x744   : > { %v1708_v29 = vadd.f32 %v1913_v19, %v1707_v28  ;;  %v2038_v30 = vpop.f32.mrb[9].mxu0 }
 0x746   : > { %v1712_v31 = vadd.f32 %v1708_v29, %v2850_v1 }
 0x748   : > { %1713 = vst.msk [vmem:[%s469_s9] sm:$0xff] %vm475_vm0, %v1712_v31 }
 0x749   : > { %2399 = shalt.err (!%p2396_p2)
}
 0x74a   : > { %s2400_s5 = scalar_lea.hbm %s3022_s18, 128  ;;  %s2404_s21 = scalar_lea.hbm %s3119_s29, 256 }
 0x74b   : > { %p2401_p10 = scmp.ne.s32.totalorder %s3022_s18, %s2400_s5  ;;  %p2405_p8 = scmp.lt.u32.totalorder %s3022_s18, %s3119_s29 }
 0x74c   : > { %p2406_p3 = scmp.lt.u32.totalorder %s2404_s21, %s2400_s5  ;;  %p2408_p6 = scmp.lt.u32.totalorder %s2400_s5, %s3022_s18 }
 0x74d   : > { %p2402_p1 = pnand %p2401_p10, %p3120_p13 }
 0x74e   : > { %p2407_p12 = por %p2406_p3, %p2405_p8 }
 0x74f   : > { %p2403_p5 = pneg %p2402_p1 }
 0x750   : > { %p2409_p4 = por %p2408_p6, %p2407_p12 }
 0x752   : > { %p2410_p9 = pnand %p2409_p4, %p2403_p5 }
 0x754   : > { %2413 = shalt.err (!%p2410_p9)
}
 0x755   : > { %2083 = dma.vmem_to_hbm [thread:$0]  (%p3120_p13), %s3024_s23, 128, %s3022_s18, %s1715_s17  }
 0x756 PF: > { %s1741_s8 = sand.u32 1, %s2464_s30   ;;  %p3121_p0 = scmp.ne.s32.totalorder %s3107_s28, 0 }
 0x757   : > { %p3122_p7 = scmp.ge.s32.totalorder %s2484_s14, 2  ;;  %s1742_s16 = scalar_lea.sflag [#allocation8], %s1741_s8 }
 0x759   : > { %p2106_p11 = pnand %p3122_p7, %p3121_p0 }
 0x75b   : > { %2459 = dma.done.wait (!%p2106_p11), %s1742_s16, 128  }
 0x75c   : > { %2461 = vsyncadd (!%p2106_p11), %s1742_s16, 4294967168  ;;  %s30_s14 = sadd.s32 1, %s2484_s14   ;;  %s3123_s9 = sld [smem:[#allocation25_spill]] }
 0x75d   : > { %p27_p2 = scmp.ge.s32.totalorder %s30_s14, 4   ;;  %s3124_s30 = smov %s2468_s10 }
 0x75e   : > { %s3125_s10 = smov %s2472_s11  ;;  %s3126_s11 = smov %s2740_s27 }
 0x75f   : > { %s3127_s12 = smov %s2480_s13  ;;  %29 = sbr.rel (!%p27_p2) target bundleno = 17 (0x11), region = 142 }
 0x762   : > { %s3128_s13 = smov %s3123_s9 }
 0x766   :  { %1747 = vsyncpa [#allocation7], 1 }
 0x767   :  { %1749 = vsyncpa [#allocation7 + $0x1], 1 }
 0x768   :  { %1750 = vsyncpa [#allocation10], 1 }
 0x769   :  { %1752 = vsyncpa [#allocation10 + $0x1], 1 }
 0x76a   :  { %1753 = vsyncpa [#allocation13], 1 }
 0x76b   :  { %1754 = vsyncpa [#allocation16], 1 }
 0x76c   :  { %1755 = vsyncpa [#allocation8], 1 }
 0x76d   :  { %1757 = vsyncpa [#allocation8 + $0x1], 1 }

</bundles_post_ra>
